<compile_context>
chip_gen: v5e
topology: v5e:2x2
jax: 0.10.0
libtpu: 0.0.40
codegen_flags: <defaults>
</compile_context>

<pallas_src>
import functools

import jax
import jax.numpy as jnp
from jax import lax
from jax.experimental import pallas as pl
from jax.experimental.pallas import tpu as pltpu


def _glm_sums_kernel(xT_ref, y_ref, w_ref, ylog_acc_ref, mu_acc_ref, *,
                     tile_n, tiles_per_core, n_valid):
    """One (D, tile_n) column tile of X^T:
         log_mu = w_row @ X^T_tile              (MXU, lane-dense (1, tile_n) result)
         accumulate y*log_mu and exp(log_mu)    (VPU / EUP) into resident outputs.
       Columns past N are masked in-kernel (no padding copies in the wrapper)."""
    p = pl.program_id(0)
    t = pl.program_id(1)

    @pl.when(t == 0)
    def _():
        ylog_acc_ref[...] = jnp.zeros_like(ylog_acc_ref)
        mu_acc_ref[...] = jnp.zeros_like(mu_acc_ref)

    # (1, D) @ (D, tile_n) -> (1, tile_n): lane-dense row straight off the MXU.
    log_mu = jnp.dot(w_ref[...], xT_ref[...],
                     preferred_element_type=jnp.float32)

    # Mask columns at/after N (ragged last tile, or fully out-of-range tiles when
    # the parallel split over-covers). Padded lanes may hold garbage -> zero both
    # terms before accumulating (exact; replaces the old pad + "-pad" correction).
    start = (p * tiles_per_core + t) * tile_n
    lane = lax.broadcasted_iota(jnp.int32, (1, tile_n), 1)
    valid = (start + lane) < n_valid

    log_mu = jnp.where(valid, log_mu, 0.0)
    mu = jnp.where(valid, jnp.exp(log_mu), 0.0)          # exp on the EUP
    ylog = jnp.where(valid, y_ref[...] * log_mu, 0.0)

    ylog_acc_ref[...] += ylog
    mu_acc_ref[...] += mu


def _poisson_sums(x_t, y_row, w_row, *, tile_n=32768, num_parallel=1,
                  vmem_limit_bytes=32 * 1024 * 1024):
    """Returns (sum(y * (X @ w)), sum(exp(X @ w))) given the lane-dense layout:
         x_t   : (D, N)  == X^T   (precompute ONCE per fit; X is fixed across steps)
         y_row : (1, N)
         w_row : (1, D)
    """
    D, N = x_t.shape

    # Clamp the tile: lane-multiple of 128 and (when N >= 128) never larger than
    # the per-core extent, so boundary blocks are ordinary ragged blocks.
    per_core = pl.cdiv(N, num_parallel)
    tile_n = max(128, (min(tile_n, per_core) // 128) * 128)

    total_tiles = pl.cdiv(N, tile_n)
    tiles_per_core = pl.cdiv(total_tiles, num_parallel)

    def data_map(p, t):
        # Clamp so tiles beyond the real extent (parallel over-coverage) re-read a
        # valid block; the in-kernel mask zeroes their contribution.
        return (0, jnp.minimum(p * tiles_per_core + t, total_tiles - 1))

    kernel = functools.partial(_glm_sums_kernel, tile_n=tile_n,
                               tiles_per_core=tiles_per_core, n_valid=N)

    cost = pl.CostEstimate(
        flops=2 * N * D + 4 * N,
        transcendentals=N,
        bytes_accessed=4 * N * (D + 1) + 4 * D + 8 * num_parallel * tile_n)

    ylog_parts, mu_parts = pl.pallas_call(
        kernel,
        out_shape=(jax.ShapeDtypeStruct((num_parallel, tile_n), jnp.float32),
                   jax.ShapeDtypeStruct((num_parallel, tile_n), jnp.float32)),
        grid_spec=pltpu.PrefetchScalarGridSpec(
            num_scalar_prefetch=0,
            grid=(num_parallel, tiles_per_core),
            in_specs=[
                pl.BlockSpec((D, tile_n), data_map),            # X^T tile (HBM-bound)
                pl.BlockSpec((1, tile_n), data_map),            # y row tile
                pl.BlockSpec((1, D), lambda p, t: (0, 0)),      # w row, VMEM-resident
            ],
            out_specs=(
                pl.BlockSpec((1, tile_n), lambda p, t: (p, 0)),  # resident accumulators
                pl.BlockSpec((1, tile_n), lambda p, t: (p, 0)),
            ),
        ),
        compiler_params=pltpu.CompilerParams(
            dimension_semantics=("parallel", "arbitrary"),
            vmem_limit_bytes=vmem_limit_bytes),
        cost_estimate=cost,
    )(x_t, y_row, w_row)

    return jnp.sum(ylog_parts), jnp.sum(mu_parts)


def prepare_voxel_data(X, y):
    """One-time layout prep. X:(N, D), y:(N, 1) -> x_t:(D, N), y_row:(1, N).
    Call ONCE per GLM fit (X/y are fixed across optimizer steps); do not call per
    forward, or the transpose re-introduces extra HBM traffic."""
    X = jnp.asarray(X, jnp.float32)
    y = jnp.asarray(y, jnp.float32)
    return X.T, y.reshape(1, -1)


def glm_poisson_forward(x_t, y_row, beta, Z=None, y_t=None, gamma=None,
                        covariates=True, tile_n=32768, num_parallel=1):
    """Negative Poisson log-likelihood, matching GLMPoisson.forward (penalty='No').
    Set num_parallel=2 on v7x (two TensorCores); keep 1 on v5e/v6e."""
    n_study = y_t.shape[0]

    w_row = beta.reshape(1, -1).astype(jnp.float32)        # (1, D) row for the MXU dot

    # Voxel branch (large, HBM-bound): Pallas kernel.
    sum_y_logmuX, sum_muX = _poisson_sums(x_t, y_row, w_row, tile_n=tile_n,
                                          num_parallel=num_parallel)

    if covariates:
        # Study branch: Z is tiny (n_study x gamma_dim) -> plain jnp, no extra launch.
        log_mu_Z = Z @ gamma
        mu_Z = jnp.exp(log_mu_Z)
        sum_yt_logmuZ = jnp.sum(y_t * log_mu_Z)
        sum_muZ = jnp.sum(mu_Z)
    else:
        sum_yt_logmuZ = jnp.float32(0.0)
        sum_muZ = jnp.float32(n_study)

    log_l = sum_y_logmuX + sum_yt_logmuZ - sum_muX * sum_muZ
    return -log_l


def glm_poisson_reference(X, y, beta, Z, y_t, gamma, covariates=True):
    """Pure-JAX reference for correctness checking."""
    log_mu_X = X @ beta
    mu_X = jnp.exp(log_mu_X)
    n_study = y_t.shape[0]
    if covariates:
        log_mu_Z = Z @ gamma
        mu_Z = jnp.exp(log_mu_Z)
    else:
        log_mu_Z = jnp.zeros((n_study, 1), X.dtype)
        mu_Z = jnp.ones((n_study, 1), X.dtype)
    log_l = (jnp.sum(y * log_mu_X) + jnp.sum(y_t * log_mu_Z)
             - jnp.sum(mu_X) * jnp.sum(mu_Z))
    return -log_l


if __name__ == "__main__":
    key = jax.random.PRNGKey(0)
    k_x, k_y, k_z, k_yt, k_b, k_g = jax.random.split(key, 6)

    # Small shapes; n_voxels deliberately NOT a multiple of 128/tile to exercise
    # the in-kernel ragged-tail masking.
    n_voxels, beta_dim = 4000, 32
    n_study, gamma_dim = 8, 4

    X = jax.random.normal(k_x, (n_voxels, beta_dim), dtype=jnp.float32) * 0.1
    y = jax.random.poisson(k_y, lam=1.0, shape=(n_voxels, 1)).astype(jnp.float32)
    Z = jax.random.normal(k_z, (n_study, gamma_dim), dtype=jnp.float32) * 0.1
    y_t = jax.random.poisson(k_yt, lam=2.0, shape=(n_study, 1)).astype(jnp.float32)

    # Same init as torch.nn.init.uniform_(w, a=-0.01, b=0.01); nn.Linear(dim, 1)
    # weight (1, dim) stored as a column (dim, 1).
    beta = jax.random.uniform(k_b, (beta_dim, 1), minval=-0.01, maxval=0.01,
                              dtype=jnp.float32)
    gamma = jax.random.uniform(k_g, (gamma_dim, 1), minval=-0.01, maxval=0.01,
                               dtype=jnp.float32)

    # One-time layout prep (hoisted transpose): done once per fit, outside forward.
    x_t, y_row = prepare_voxel_data(X, y)

    # 1) Default large-tile path (single ragged tile pair, covariates=True).
    neg_ll = jax.block_until_ready(
        glm_poisson_forward(x_t, y_row, beta, Z, y_t, gamma, covariates=True))
    ref = glm_poisson_reference(X, y, beta, Z, y_t, gamma, covariates=True)
    assert jnp.allclose(neg_ll, ref, rtol=1e-4, atol=1e-2), (neg_ll, ref)

    # 2) Multi-tile accumulation + masked last tile (covariates=False path).
    neg_ll_nc = jax.block_until_ready(
        glm_poisson_forward(x_t, y_row, beta, Z, y_t, gamma, covariates=False,
                            tile_n=512))
    ref_nc = glm_poisson_reference(X, y, beta, Z, y_t, gamma, covariates=False)
    assert jnp.allclose(neg_ll_nc, ref_nc, rtol=1e-4, atol=1e-2), (neg_ll_nc, ref_nc)

    # 3) Two-chunk "parallel" axis (how v7x would run it); correct (serial) on 1-TC parts.
    neg_ll_p2 = jax.block_until_ready(
        glm_poisson_forward(x_t, y_row, beta, Z, y_t, gamma, covariates=True,
                            tile_n=512, num_parallel=2))
    assert jnp.allclose(neg_ll_p2, ref, rtol=1e-4, atol=1e-2), (neg_ll_p2, ref)

    print("KERNEL_OK")
</pallas_src>

<mosaic_0001>
module attributes {stable_mosaic.version = 11 : i64} {
  func.func @_glm_sums_kernel(%arg0: i32, %arg1: i32, %arg2: memref<32x3968xf32, #tpu.memory_space<vmem>>, %arg3: memref<1x3968xf32, #tpu.memory_space<vmem>>, %arg4: memref<1x32xf32, #tpu.memory_space<vmem>>, %arg5: memref<1x3968xf32, #tpu.memory_space<vmem>>, %arg6: memref<1x3968xf32, #tpu.memory_space<vmem>>) attributes {dimension_semantics = [#tpu.dimension_semantics<parallel>, #tpu.dimension_semantics<arbitrary>], iteration_bounds = array<i64: 1, 2>, scalar_prefetch = 0 : i64, scratch_operands = 0 : i64, tpu.core_type = #tpu.core_type<tc>, window_params = [{transform_indices = @transform_0, window_bounds = array<i64: 32, 3968>}, {transform_indices = @transform_1, window_bounds = array<i64: 1, 3968>}, {pipeline_mode = #tpu.pipeline_mode<synchronous>, transform_indices = @transform_2, window_bounds = array<i64: 1, 32>}, {transform_indices = @transform_3, window_bounds = array<i64: 1, 3968>}, {transform_indices = @transform_4, window_bounds = array<i64: 1, 3968>}]} {
    %c0_i32 = arith.constant 0 : i32
    %0 = arith.cmpi eq, %arg1, %c0_i32 : i32
    %1 = arith.extui %0 : i1 to i32
    %c0_i32_0 = arith.constant 0 : i32
    %2 = arith.cmpi ne, %1, %c0_i32_0 : i32
    scf.if %2 {
      %cst_17 = arith.constant 0.000000e+00 : f32
      %29 = vector.broadcast %cst_17 : f32 to vector<1x3968xf32>
      %c0_18 = arith.constant 0 : index
      %c0_19 = arith.constant 0 : index
      %30 = vector.load %arg5[%c0_18, %c0_19] : memref<1x3968xf32, #tpu.memory_space<vmem>>, vector<1x3968xf32>
      tpu.vector_store %arg5[%c0_18, %c0_19], %29 {strides = array<i32>} : memref<1x3968xf32, #tpu.memory_space<vmem>>, vector<1x3968xf32>,
      %cst_20 = arith.constant 0.000000e+00 : f32
      %31 = vector.broadcast %cst_20 : f32 to vector<1x3968xf32>
      %c0_21 = arith.constant 0 : index
      %c0_22 = arith.constant 0 : index
      %32 = vector.load %arg6[%c0_21, %c0_22] : memref<1x3968xf32, #tpu.memory_space<vmem>>, vector<1x3968xf32>
      tpu.vector_store %arg6[%c0_21, %c0_22], %31 {strides = array<i32>} : memref<1x3968xf32, #tpu.memory_space<vmem>>, vector<1x3968xf32>,
    } else {
    }
    %c0 = arith.constant 0 : index
    %c0_1 = arith.constant 0 : index
    %3 = vector.load %arg4[%c0, %c0_1] : memref<1x32xf32, #tpu.memory_space<vmem>>, vector<1x32xf32>
    %c0_2 = arith.constant 0 : index
    %c0_3 = arith.constant 0 : index
    %4 = vector.load %arg2[%c0_2, %c0_3] : memref<32x3968xf32, #tpu.memory_space<vmem>>, vector<32x3968xf32>
    %cst = arith.constant dense<0.000000e+00> : vector<1x3968xf32>
    %5 = tpu.matmul %3, %4, %cst {dimension_numbers = #tpu.dot_dimension_numbers<[1], [0], [0], [1], [0, 0, 1, 1], [], []>} : vector<1x32xf32>, vector<32x3968xf32>, vector<1x3968xf32> -> vector<1x3968xf32>
    %c2_i32 = arith.constant 2 : i32
    %6 = arith.muli %arg0, %c2_i32 : i32
    %7 = arith.addi %6, %arg1 : i32
    %c3968_i32 = arith.constant 3968 : i32
    %8 = arith.muli %7, %c3968_i32 : i32
    %9 = tpu.iota {dimensions = array<i32: 1>} : vector<1x3968xi32>
    %10 = vector.broadcast %8 : i32 to vector<1x3968xi32>
    %11 = arith.addi %10, %9 : vector<1x3968xi32>
    %c4000_i32 = arith.constant 4000 : i32
    %12 = vector.broadcast %c4000_i32 : i32 to vector<1x3968xi32>
    %13 = arith.cmpi slt, %11, %12 : vector<1x3968xi32>
    %cst_4 = arith.constant 0.000000e+00 : f32
    %14 = vector.broadcast %cst_4 : f32 to vector<1x3968xf32>
    %15 = arith.select %13, %5, %14 : vector<1x3968xi1>, vector<1x3968xf32>
    %16 = math.exp %15 : vector<1x3968xf32>
    %cst_5 = arith.constant 0.000000e+00 : f32
    %17 = vector.broadcast %cst_5 : f32 to vector<1x3968xf32>
    %18 = arith.select %13, %16, %17 : vector<1x3968xi1>, vector<1x3968xf32>
    %c0_6 = arith.constant 0 : index
    %c0_7 = arith.constant 0 : index
    %19 = vector.load %arg3[%c0_6, %c0_7] : memref<1x3968xf32, #tpu.memory_space<vmem>>, vector<1x3968xf32>
    %20 = arith.mulf %19, %15 : vector<1x3968xf32>
    %cst_8 = arith.constant 0.000000e+00 : f32
    %21 = vector.broadcast %cst_8 : f32 to vector<1x3968xf32>
    %22 = arith.select %13, %20, %21 : vector<1x3968xi1>, vector<1x3968xf32>
    %c0_9 = arith.constant 0 : index
    %c0_10 = arith.constant 0 : index
    %23 = vector.load %arg5[%c0_9, %c0_10] : memref<1x3968xf32, #tpu.memory_space<vmem>>, vector<1x3968xf32>
    %24 = arith.addf %23, %22 : vector<1x3968xf32>
    %c0_11 = arith.constant 0 : index
    %c0_12 = arith.constant 0 : index
    %25 = vector.load %arg5[%c0_11, %c0_12] : memref<1x3968xf32, #tpu.memory_space<vmem>>, vector<1x3968xf32>
    tpu.vector_store %arg5[%c0_11, %c0_12], %24 {strides = array<i32>} : memref<1x3968xf32, #tpu.memory_space<vmem>>, vector<1x3968xf32>,
    %c0_13 = arith.constant 0 : index
    %c0_14 = arith.constant 0 : index
    %26 = vector.load %arg6[%c0_13, %c0_14] : memref<1x3968xf32, #tpu.memory_space<vmem>>, vector<1x3968xf32>
    %27 = arith.addf %26, %18 : vector<1x3968xf32>
    %c0_15 = arith.constant 0 : index
    %c0_16 = arith.constant 0 : index
    %28 = vector.load %arg6[%c0_15, %c0_16] : memref<1x3968xf32, #tpu.memory_space<vmem>>, vector<1x3968xf32>
    tpu.vector_store %arg6[%c0_15, %c0_16], %27 {strides = array<i32>} : memref<1x3968xf32, #tpu.memory_space<vmem>>, vector<1x3968xf32>,
    return
  }
  func.func @transform_0(%arg0: i32, %arg1: i32) -> (i32, i32) {
    %c2_i32 = arith.constant 2 : i32
    %0 = arith.muli %arg0, %c2_i32 : i32
    %1 = arith.addi %0, %arg1 : i32
    %c1_i32 = arith.constant 1 : i32
    %2 = arith.minsi %1, %c1_i32 : i32
    %c0_i32 = arith.constant 0 : i32
    %c0_i32_0 = arith.constant 0 : i32
    return %c0_i32, %2 : i32, i32
  }
  func.func @transform_1(%arg0: i32, %arg1: i32) -> (i32, i32) {
    %c2_i32 = arith.constant 2 : i32
    %0 = arith.muli %arg0, %c2_i32 : i32
    %1 = arith.addi %0, %arg1 : i32
    %c1_i32 = arith.constant 1 : i32
    %2 = arith.minsi %1, %c1_i32 : i32
    %c0_i32 = arith.constant 0 : i32
    %c0_i32_0 = arith.constant 0 : i32
    return %c0_i32, %2 : i32, i32
  }
  func.func @transform_2(%arg0: i32, %arg1: i32) -> (i32, i32) {
    %c0_i32 = arith.constant 0 : i32
    %c0_i32_0 = arith.constant 0 : i32
    %c0_i32_1 = arith.constant 0 : i32
    return %c0_i32, %c0_i32_0 : i32, i32
  }
  func.func @transform_3(%arg0: i32, %arg1: i32) -> (i32, i32) {
    %c0_i32 = arith.constant 0 : i32
    %c0_i32_0 = arith.constant 0 : i32
    return %arg0, %c0_i32 : i32, i32
  }
  func.func @transform_4(%arg0: i32, %arg1: i32) -> (i32, i32) {
    %c0_i32 = arith.constant 0 : i32
    %c0_i32_0 = arith.constant 0 : i32
    return %arg0, %c0_i32 : i32, i32
  }
}

</mosaic_0001>

<bundles_post_ra>
// kernel: tpu_custom_call.1
= control target key start
LH: loop header
LB: loop body
LE: loop exit
PB: predicated region body
PF: predicated region fallthrough
CT: control target
= control target key end

     0   :  { %10 = vsyncpa [#allocation3], 0  ;;  %s3135_s0 = inlined_call_operand.hbm [shape: f32[32,4000], index: 0, kind: input, shape index: {}]   ;;  %s3136_s1 = inlined_call_operand.hbm [shape: f32[1,4000], index: 1, kind: input, shape index: {}]   ;;  %s3137_s2 = inlined_call_operand.vmem [shape: f32[1,32], index: 2, kind: input, shape index: {}]   ;;  %s3138_s3 = inlined_call_operand.hbm [shape: f32[1,3968], index: 3, kind: output, shape index: {0}]   ;;  %s3139_s4 = inlined_call_operand.hbm [shape: f32[1,3968], index: 4, kind: output, shape index: {1}]  }
   0x1   :  { %12 = vsyncpa [#allocation3 + $0x1], 0 }
   0x2   :  { %13 = vsyncpa [#allocation6], 0 }
   0x3   :  { %15 = vsyncpa [#allocation6 + $0x1], 0 }
   0x4   :  { %16 = vsyncpa [#allocation4], 0 }
   0x5   :  { %17 = vsyncpa [#allocation9], 0  ;;  %s2252_s15 = smov 0   ;;  %s2254_s16 = smov 0  }
   0x6   :  { %s2256_s17 = smov 0   ;;  %s2258_s18 = smov 0  }
   0x7   :  { %s2260_s19 = smov 0   ;;  %s2262_s20 = smov 0  }
   0x8 LB: > { %s32_s21 = sadd.s32 1, %s2214_s19  ;;  %p41_p1 = scmp.lt.s32.totalorder %s2214_s19, 1  ;;  %s2218_s20 = sphi %s2262_s20, %s23_s20   ;;  %s2214_s19 = sphi %s2260_s19, %s3212_s19   ;;  %s2210_s18 = sphi %s2258_s18, %s3211_s18   ;;  %s2206_s17 = sphi %s2256_s17, %s3210_s17   ;;  %s2202_s16 = sphi %s2254_s16, %s3209_s16   ;;  %s2198_s15 = sphi %s2252_s15, %s3208_s15  }
   0x9   : > { %p33_p0 = scmp.ge.s32.totalorder %s32_s21, 2  ;;  %s3140_s22 = sadd.s32 4294967295, %s2218_s20  }
   0xa   : > { %p57_p2 = scmp.ne.s32.totalorder %s2206_s17, %s2202_s16  ;;  %p58_p4 = scmp.eq.s32.totalorder %s2218_s20, 0 }
   0xb   : > { %s3214_s21 = smov (%p33_p0, %s32_s21), 0  ;;  %p63_p5 = scmp.ne.s32.totalorder %s2202_s16, %s2198_s15 }
   0xc   : > { %s2288_s23 = scalar_select %p41_p1, %s2214_s19, 1 }
   0xd   : > { %p45_p3 = scmp.lt.s32.totalorder %s3214_s21, 1  ;;  %p64_p6 = scmp.eq.s32.totalorder %s3140_s22, 0 }
   0xe   : > { %p2296_p7 = por %p58_p4, %p57_p2  ;;  %s50_s28 = sadd.s32 1, %s2206_s17 }
   0xf   : > { %s46_s24 = scalar_select %p45_p3, %s3214_s21, 1 }
  0x10   : > { %p2300_p8 = por %p64_p6, %p63_p5  ;;  %p1839_p10 = scmp.ge.s32.totalorder %s2218_s20, 2 }
  0x11   : > { %s47_s27 = ssub.s32 %s2288_s23, %s46_s24 }
  0x12   : > { %p48_p9 = scmp.eq.s32.totalorder %s47_s27, 0  ;;  %193 = sbr.rel (%p1839_p10) target bundleno = 96 (0x60), region = 20 }
  0x14   : > { %s2307_s29 = scalar_select %p48_p9, %s2206_s17, %s50_s28  }
  0x17   : > { %196 = sbr.rel (!%p2296_p7) target bundleno = 61 (0x3d), region = 24  ;;  %s197_s30 = sand.u32 (%p2296_p7), 1, %s2206_s17  }
  0x18   : > { %s206_s5 = smul.u32 (%p2296_p7), 31, %s2288_s23  ;;  %s2317_s11 = scalar_lea.sflag (%p2296_p7), [#allocation3], %s197_s30 }
  0x19   : > { %s1889_s6 = smul.u32 (%p2296_p7), 992, %s197_s30 }
  0x1a   : > { %s207_s7 = ssub.s32 (%p2296_p7), 32, %s206_s5 }
  0x1b   : > { %p208_p11 = scmp.lt.s32.totalorder (%p2296_p7), %s207_s7, 31  ;;  %s201_s12 = scalar_lea.vmem (%p2296_p7), [#allocation2], %s1889_s6 }
  0x1d   : > { %s3216_s7 = smov (!%p208_p11, %s207_s7), 31 }
  0x1e   : > { %s1840_s8 = sshll.u32 %s3216_s7, 5 }
  0x1f   : > { %s211_s9 = ssub.s32 992, %s1840_s8 }
  0x20   : > { %s212_s10 = sshll.u32 %s211_s9, 4 }
  0x21   : > { %213 = vsyncadd %s2317_s11, %s212_s10  ;;  %p2320_p12 = scmp.ne.s32.totalorder %s1840_s8, 0  ;;  %s1886_s14 = smul.u32 248, %s2288_s23 }
  0x22   : > { %s1843_s15 = sshll.u32 %s3216_s7, 3  ;;  %s2326_s24 = sshll.u32 %s201_s12, 4  ;;  %s222_s24 = int_to_ptr.vmem [resolvable:$true] %s2326_s24 }
  0x23   : > { %s216_s30 = scalar_lea.hbm %s3135_s0, %s1886_s14  ;;  %s1888_s6 = sshll.u32 %s3216_s7, 9 }
  0x24   : > { %s219_s5 = sshll.u32 %s216_s30, 4  ;;  %s2024_s9 = sshrl.u32 %s1888_s6, 4  ;;  %s2333_s5 = int_to_ptr.hbm [resolvable:$true] %s219_s5 }
  0x25   : > { %s2022_s8 = sshra.s32 %s2333_s5, 4  ;;  %s2033_s27 = scalar_lea.hbm %s3135_s0, 1024  ;;  %s2023_s8 = int_to_ptr.hbm [resolvable:$true] %s2022_s8 }
  0x26   : > { %s2029_s10 = scalar_lea.hbm %s2023_s8, %s2024_s9 }
  0x27   : > { %p2030_p13 = scmp.ne.s32.totalorder %s2023_s8, %s2029_s10  ;;  %p2035_p2 = scmp.lt.s32.totalorder %s2033_s27, %s2029_s10 }
  0x29   : > { %p2031_p0 = pnand %p2030_p13, %p2320_p12 }
  0x2b   : > { %p2032_p1 = pneg %p2031_p0 }
  0x2d   : > { %p2037_p3 = pnand %p2035_p2, %p2032_p1 }
  0x2f   : > { %2040 = shalt.err (!%p2037_p3)
}
  0x30   : > { %s2041_s14 = sshra.s32 %s222_s24, 4  ;;  %s2220_s30 = smov [#allocation2]   ;;  %s2042_s14 = int_to_ptr.vmem [resolvable:$true] %s2041_s14 }
  0x31   : > { %s2048_s28 = scalar_lea.vmem %s2042_s14, %s2024_s9  ;;  %s2052_s8 = scalar_lea.vmem %s2220_s30, 1984 }
  0x32   : > { %p2049_p4 = scmp.ne.s32.totalorder %s2042_s14, %s2048_s28  ;;  %p2054_p9 = scmp.lt.s32.totalorder %s2052_s8, %s2048_s28 }
  0x34   : > { %p2050_p5 = pnand %p2049_p4, %p2320_p12 }
  0x36   : > { %p2051_p6 = pneg %p2050_p5 }
  0x38   : > { %p2056_p10 = pnand %p2054_p9, %p2051_p6 }
  0x3a   : > { %2059 = shalt.err (!%p2056_p10)
}
  0x3b   : > { %s2221_s22 = smov 4096   ;;  %s2222_s10 = smov 3968  }
  0x3c   : > { %227 = dma.hbm_to_vmem [thread:$0]  (%p2320_p12), %s2333_s5, %s1888_s6, %s222_s24, %s2317_s11, %s2221_s22, %s2222_s10, %s1843_s15  }
  0x3d PF: > { %230 = sbr.rel (!%p2296_p7) target bundleno = 96 (0x60), region = 28  ;;  %s231_s9 = sand.u32 (%p2296_p7), 1, %s2206_s17  }
  0x3e   : > { %s240_s12 = smul.u32 (%p2296_p7), 31, %s2288_s23  ;;  %s2364_s30 = scalar_lea.sflag (%p2296_p7), [#allocation6], %s231_s9 }
  0x3f   : > { %s1890_s27 = smul.u32 (%p2296_p7), 31, %s231_s9 }
  0x40   : > { %s241_s14 = ssub.s32 (%p2296_p7), 32, %s240_s12 }
  0x41   : > { %p242_p11 = scmp.lt.s32.totalorder (%p2296_p7), %s241_s14, 31  ;;  %s235_s7 = scalar_lea.vmem (%p2296_p7), [#allocation5], %s1890_s27 }
  0x43   : > { %s3218_s14 = smov (!%p242_p11, %s241_s14), 31 }
  0x44   : > { %s244_s28 = ssub.s32 31, %s3218_s14 }
  0x45   : > { %s245_s13 = sshll.u32 %s244_s28, 4 }
  0x46   : > { %246 = vsyncadd %s2364_s30, %s245_s13  ;;  %p1846_p7 = scmp.ne.s32.totalorder %s3218_s14, 0  ;;  %s248_s11 = scalar_lea.hbm %s3136_s1, %s240_s12 }
  0x47   : > { %s249_s15 = sshll.u32 %s3218_s14, 4  ;;  %s250_s24 = sshll.u32 %s248_s11, 4  ;;  %s251_s24 = int_to_ptr.hbm [resolvable:$true] %s250_s24 }
  0x48   : > { %s252_s5 = sshll.u32 %s235_s7, 4  ;;  %s2061_s6 = sshra.s32 %s251_s24, 4  ;;  %s253_s5 = int_to_ptr.vmem [resolvable:$true] %s252_s5  ;;  %s2062_s6 = int_to_ptr.hbm [resolvable:$true] %s2061_s6 }
  0x49   : > { %s2063_s8 = sshrl.u32 %s249_s15, 4  ;;  %s2072_s27 = scalar_lea.hbm %s3136_s1, 32 }
  0x4a   : > { %s2068_s22 = scalar_lea.hbm %s2062_s6, %s2063_s8 }
  0x4b   : > { %p2069_p12 = scmp.ne.s32.totalorder %s2062_s6, %s2068_s22  ;;  %p2074_p1 = scmp.lt.s32.totalorder %s2072_s27, %s2068_s22 }
  0x4d   : > { %p2070_p13 = pnand %p2069_p12, %p1846_p7 }
  0x4f   : > { %p2071_p0 = pneg %p2070_p13 }
  0x51   : > { %p2076_p2 = pnand %p2074_p1, %p2071_p0 }
  0x53   : > { %2079 = shalt.err (!%p2076_p2)
}
  0x54   : > { %s2080_s12 = sshra.s32 %s253_s5, 4  ;;  %s2223_s13 = smov [#allocation5]   ;;  %s2081_s12 = int_to_ptr.vmem [resolvable:$true] %s2080_s12 }
  0x55   : > { %s2087_s28 = scalar_lea.vmem %s2081_s12, %s2063_s8  ;;  %s2091_s7 = scalar_lea.vmem %s2223_s13, 62 }
  0x56   : > { %p2088_p3 = scmp.ne.s32.totalorder %s2081_s12, %s2087_s28  ;;  %p2093_p6 = scmp.lt.s32.totalorder %s2091_s7, %s2087_s28 }
  0x58   : > { %p2089_p4 = pnand %p2088_p3, %p1846_p7 }
  0x5a   : > { %p2090_p5 = pneg %p2089_p4 }
  0x5c   : > { %p2095_p9 = pnand %p2093_p6, %p2090_p5 }
  0x5e   : > { %2098 = shalt.err (!%p2095_p9)
}
  0x5f   : > { %255 = dma.hbm_to_vmem [thread:$0]  (%p1846_p7), %s251_s24, %s249_s15, %s253_s5, %s2364_s30  }
  0x60 PF: > { %p1847_p10 = scmp.ge.s32.totalorder %s2218_s20, 1  ;;  %p257_p11 = scmp.lt.s32.totalorder %s2218_s20, 3 }
  0x62   : > { %p258_p12 = pnand %p1847_p10, %p257_p11 }
  0x63   : > { %s263_s25 = sand.u32 (!%p258_p12), 1, %s2202_s16  }
  0x64   : > { %261 = sbr.rel (%p258_p12) target bundleno = 389 (0x185), region = 32  ;;  %s264_s11 = scalar_lea.sflag (!%p258_p12), [#allocation3], %s263_s25 }
  0x65   : > { %s1891_s23 = smul.u32 (!%p258_p12), 992, %s263_s25 }
  0x67   : > { %s2389_s6 = scalar_lea.vmem (!%p258_p12), [#allocation2], %s1891_s23 }
  0x69   : > { %2181 = dma.done.wait (%p2300_p8), %s264_s11, 15872  }
  0x6a   : > { %2183 = vsyncadd (%p2300_p8), %s264_s11, 4294951424  ;;  %s1892_s14 = smul.u32 31, %s263_s25  ;;  %s274_s30 = scalar_lea.sflag [#allocation6], %s263_s25 }
  0x6c   : > { %s2395_s15 = scalar_lea.vmem [#allocation5], %s1892_s14 }
  0x6d   : > { %2185 = dma.done.wait (%p2300_p8), %s274_s30, 496  }
  0x6e   : > { %2187 = vsyncadd (%p2300_p8), %s274_s30, 4294966800  ;;  %p1848_p7 = scmp.ne.s32.totalorder %s2210_s18, 0 }
  0x70   : > { %323 = sbr.rel (%p1848_p7) target bundleno = 126 (0x7e), region = 44 }
  0x75   : > { %v327_v0 = vlaneseq  ;;  %v2224_v1 = vmov 0.0  }
  0x76   : > { %324 = vst [vmem:[#allocation7] sm:$0xff] %v2224_v1 }
  0x77   : > { %325 = vst [vmem:[#allocation7 + $0x8] sm:$0xff] %v2224_v1  ;;  %vm329_vm0 = vcmp.lt.s32.totalorder %v327_v0, 896 }
  0x78   : > { %326 = vst [vmem:[#allocation7 + $0x10] sm:$0xff] %v2224_v1 }
  0x79   : > { %332 = vst [vmem:[#allocation8] sm:$0xff] %v2224_v1 }
  0x7a   : > { %333 = vst [vmem:[#allocation8 + $0x8] sm:$0xff] %v2224_v1 }
  0x7b   : > { %334 = vst [vmem:[#allocation8 + $0x10] sm:$0xff] %v2224_v1 }
  0x7c   : > { %331 = vst.msk [vmem:[#allocation7 + $0x18] sm:$0x7f] %vm329_vm0, %v2224_v1 }
  0x7d   : > { %335 = vst.msk [vmem:[#allocation8 + $0x18] sm:$0x7f] %vm329_vm0, %v2224_v1 }
  0x7e PF: > { %v432_v2 = vld [vmem:[%s2389_s6 + $0x2f8] sm:$0xff]  ;;  %v433_v3 = vld [vmem:[%s2389_s6 + $0x300] sm:$0xff]  ;;  %v402_v5 = vld [vmem:[%s2389_s6 + $0x208] sm:$0xff]  ;;  %vm461_vm1 = vcmask 261120   ;;  %s1087_s5 = smul.u32 3968, %s2210_s18  ;;  %vm1369_vm6 = vcmask 1040384  }
  0x7f   : > { %v401_v4 = vld [vmem:[%s2389_s6 + $0x200] sm:$0xff]  ;;  %517 = vmatpush.msra.mxu2 %v432_v2  ;;  %537 = vmatpush.msra.mxu3 %v433_v3  ;;  %v431_v6 = vld [vmem:[%s2389_s6 + $0x2f0] sm:$0xff]  ;;  %v370_v7 = vld [vmem:[%s2389_s6 + $0x108] sm:$0xff]  ;;  %vm1371_vm7 = vcmask 1042434   ;;  %vm3142_vm10 = vcmask 1044484   ;;  %vm3141_vm13 = vcmask 1046534  }
  0x80   : > { %497 = vmatpush.msra.mxu1 %v431_v6  ;;  %v371_v8 = vld [vmem:[%s2389_s6 + $0x110] sm:$0xff]  ;;  %v430_v9 = vld [vmem:[%s2389_s6 + $0x2e8] sm:$0xff]  ;;  %v400_v10 = vld [vmem:[%s2389_s6 + $0x1f8] sm:$0xff]  ;;  %vm3145_vm14 = vcmask 1041408   ;;  %vm3144_vm15 = vcmask 1045508   ;;  %s2225_s18 = smov [#allocation7]  }
  0x81   : > { %518 = vmatpush.msra.mxu2 %v401_v4  ;;  %538 = vmatpush.msra.mxu3 %v402_v5  ;;  %v399_v11 = vld [vmem:[%s2389_s6 + $0x1f0] sm:$0xff]  ;;  %v340_v13 = vld [vmem:[%s2389_s6 + $0x18] sm:$0xff]  ;;  %v369_v14 = vld [vmem:[%s2389_s6 + $0x100] sm:$0xff]  ;;  %s1722_s8 = sshll.u32 %s2225_s18, 4  ;;  %s1724_s9 = sshll.u32 %s3138_s3, 4  ;;  %s1723_s8 = int_to_ptr.vmem [resolvable:$true] %s1722_s8  ;;  %s1725_s9 = int_to_ptr.hbm [resolvable:$true] %s1724_s9 }
  0x82   : > { %477 = vmatpush.msra.mxu0 %v430_v9  ;;  %498 = vmatpush.msra.mxu1 %v400_v10  ;;  %v339_v12 = vld [vmem:[%s2389_s6 + $0x10] sm:$0xff]  ;;  %v2418_v15 = vld [vmem:[%s3137_s2] sm:$0x1]  ;;  %v436_v16 = vld [vmem:[%s2389_s6 + $0x318] sm:$0xff]  ;;  %s2226_s27 = smov [#allocation8]   ;;  %s1738_s7 = sshll.u32 %s3139_s4, 4  ;;  %s1739_s7 = int_to_ptr.hbm [resolvable:$true] %s1738_s7 }
  0x83   : > { %519 = vmatpush.msra.mxu2 %v370_v7  ;;  %539 = vmatpush.msra.mxu3 %v371_v8  ;;  %v437_v17 = vld [vmem:[%s2389_s6 + $0x320] sm:$0xff]  ;;  %v368_v18 = vld [vmem:[%s2389_s6 + $0xf8] sm:$0xff]  ;;  %v338_v19 = vld [vmem:[%s2389_s6 + $0x8] sm:$0xff]  ;;  %s1736_s12 = sshll.u32 %s2226_s27, 4  ;;  %s3206_s25 = sadd.s32 4294967295, %s2218_s20   ;;  %s1737_s12 = int_to_ptr.vmem [resolvable:$true] %s1736_s12 }
  0x84   : > { %478 = vmatpush.msra.mxu0 %v399_v11  ;;  %499 = vmatpush.msra.mxu1 %v369_v14  ;;  %v405_v20 = vld [vmem:[%s2389_s6 + $0x220] sm:$0xff]  ;;  %v406_v21 = vld [vmem:[%s2389_s6 + $0x228] sm:$0xff]  ;;  %v435_v23 = vld [vmem:[%s2389_s6 + $0x310] sm:$0xff]  ;;  %p3101_p8 = scmp.eq.s32.totalorder %s3206_s25, 1 }
  0x85   : > { %520 = vmatpush.msra.mxu2 %v339_v12  ;;  %540 = vmatpush.msra.mxu3 %v340_v13  ;;  %v337_v22 = vld [vmem:[%s2389_s6] sm:$0xff]  ;;  %v374_v24 = vld [vmem:[%s2389_s6 + $0x128] sm:$0xff]  ;;  %v375_v25 = vld [vmem:[%s2389_s6 + $0x130] sm:$0xff] }
  0x86   : > { %1851 = vmatmul.msk.f32.vlgmr.msra.gmra.mxu2 %vm461_vm1, %v2418_v15  ;;  %1852 = vmatmul.msk.f32.vlgmr.msra.gmra.mxu3 %vm461_vm1, %v2418_v15  ;;  %v434_v26 = vld [vmem:[%s2389_s6 + $0x308] sm:$0xff]  ;;  %v404_v27 = vld [vmem:[%s2389_s6 + $0x218] sm:$0xff]  ;;  %v343_v28 = vld [vmem:[%s2389_s6 + $0x30] sm:$0xff] }
  0x87   : > { %597 = vmatpush.msrb.mxu2 %v436_v16  ;;  %617 = vmatpush.msrb.mxu3 %v437_v17  ;;  %v344_v29 = vld [vmem:[%s2389_s6 + $0x38] sm:$0xff]  ;;  %v403_v30 = vld [vmem:[%s2389_s6 + $0x210] sm:$0xff]  ;;  %v373_v31 = vld [vmem:[%s2389_s6 + $0x120] sm:$0xff] }
  0x88   : > { %479 = vmatpush.msra.mxu0 %v368_v18  ;;  %500 = vmatpush.msra.mxu1 %v338_v19  ;;  %v440_v32 = vld [vmem:[%s2389_s6 + $0x338] sm:$0xff]  ;;  %v441_v34 = vld [vmem:[%s2389_s6 + $0x340] sm:$0xff]  ;;  %v342_v35 = vld [vmem:[%s2389_s6 + $0x28] sm:$0xff] }
  0x89   : > { %598 = vmatpush.msrb.mxu2 %v405_v20  ;;  %1850 = vmatmul.msk.f32.vlgmr.msra.gmra.mxu1 %vm461_vm1, %v2418_v15  ;;  %v372_v33 = vld [vmem:[%s2389_s6 + $0x118] sm:$0xff]  ;;  %v409_v36 = vld [vmem:[%s2389_s6 + $0x240] sm:$0xff]  ;;  %v410_v38 = vld [vmem:[%s2389_s6 + $0x248] sm:$0xff] }
  0x8a   : > { %618 = vmatpush.msrb.mxu3 %v406_v21  ;;  %480 = vmatpush.msra.mxu0 %v337_v22  ;;  %v341_v37 = vld [vmem:[%s2389_s6 + $0x20] sm:$0xff]  ;;  %v439_v39 = vld [vmem:[%s2389_s6 + $0x330] sm:$0xff]  ;;  %v378_v40 = vld [vmem:[%s2389_s6 + $0x148] sm:$0xff] }
  0x8b   : > { %577 = vmatpush.msrb.mxu1 %v435_v23  ;;  %599 = vmatpush.msrb.mxu2 %v374_v24  ;;  %v379_v41 = vld [vmem:[%s2389_s6 + $0x150] sm:$0xff]  ;;  %v438_v42 = vld [vmem:[%s2389_s6 + $0x328] sm:$0xff]  ;;  %v408_v43 = vld [vmem:[%s2389_s6 + $0x238] sm:$0xff] }
  0x8c   : > { %1849 = vmatmul.msk.f32.vlgmr.msra.gmra.mxu0 %vm461_vm1, %v2418_v15  ;;  %619 = vmatpush.msrb.mxu3 %v375_v25  ;;  %v347_v44 = vld [vmem:[%s2389_s6 + $0x50] sm:$0xff]  ;;  %v348_v45 = vld [vmem:[%s2389_s6 + $0x58] sm:$0xff]  ;;  %v377_v47 = vld [vmem:[%s2389_s6 + $0x140] sm:$0xff] }
  0x8d   : > { %557 = vmatpush.msrb.mxu0 %v434_v26  ;;  %578 = vmatpush.msrb.mxu1 %v404_v27  ;;  %v407_v46 = vld [vmem:[%s2389_s6 + $0x230] sm:$0xff]  ;;  %v444_v48 = vld [vmem:[%s2389_s6 + $0x358] sm:$0xff]  ;;  %v445_v50 = vld [vmem:[%s2389_s6 + $0x360] sm:$0xff] }
  0x8e   : > { %600 = vmatpush.msrb.mxu2 %v343_v28  ;;  %620 = vmatpush.msrb.mxu3 %v344_v29  ;;  %v376_v49 = vld [vmem:[%s2389_s6 + $0x138] sm:$0xff]  ;;  %v346_v51 = vld [vmem:[%s2389_s6 + $0x48] sm:$0xff]  ;;  %v413_v52 = vld [vmem:[%s2389_s6 + $0x260] sm:$0xff] }
  0x8f   : > { %558 = vmatpush.msrb.mxu0 %v403_v30  ;;  %579 = vmatpush.msrb.mxu1 %v373_v31  ;;  %v345_v53 = vld [vmem:[%s2389_s6 + $0x40] sm:$0xff]  ;;  %v414_v54 = vld [vmem:[%s2389_s6 + $0x268] sm:$0xff]  ;;  %v443_v55 = vld [vmem:[%s2389_s6 + $0x350] sm:$0xff] }
  0x90   : > { %1855 = vmatmul.msk.f32.vlgmr.msrb.gmra.mxu2 %vm461_vm1, %v2418_v15  ;;  %1856 = vmatmul.msk.f32.vlgmr.msrb.gmra.mxu3 %vm461_vm1, %v2418_v15  ;;  %v382_v56 = vld [vmem:[%s2389_s6 + $0x168] sm:$0xff]  ;;  %v383_v57 = vld [vmem:[%s2389_s6 + $0x170] sm:$0xff]  ;;  %v412_v59 = vld [vmem:[%s2389_s6 + $0x258] sm:$0xff] }
  0x91   : > { %677 = vmatpush.msra.mxu2 %v440_v32  ;;  %559 = vmatpush.msrb.mxu0 %v372_v33  ;;  %v442_v58 = vld [vmem:[%s2389_s6 + $0x348] sm:$0xff]  ;;  %v351_v60 = vld [vmem:[%s2389_s6 + $0x70] sm:$0xff]  ;;  %v352_v61 = vld [vmem:[%s2389_s6 + $0x78] sm:$0xff] }
  0x92   : > { %697 = vmatpush.msra.mxu3 %v441_v34  ;;  %580 = vmatpush.msrb.mxu1 %v342_v35  ;;  %v411_v62 = vld [vmem:[%s2389_s6 + $0x250] sm:$0xff]  ;;  %v381_v63 = vld [vmem:[%s2389_s6 + $0x160] sm:$0xff]  ;;  %v448_v0 = vld [vmem:[%s2389_s6 + $0x378] sm:$0xff] }
  0x93   : > { %678 = vmatpush.msra.mxu2 %v409_v36  ;;  %560 = vmatpush.msrb.mxu0 %v341_v37  ;;  %v380_v1 = vld [vmem:[%s2389_s6 + $0x158] sm:$0xff]  ;;  %v449_v2 = vld [vmem:[%s2389_s6 + $0x380] sm:$0xff]  ;;  %v350_v3 = vld [vmem:[%s2389_s6 + $0x68] sm:$0xff] }
  0x94   : > { %1854 = vmatmul.msk.f32.vlgmr.msrb.gmra.mxu1 %vm461_vm1, %v2418_v15  ;;  %698 = vmatpush.msra.mxu3 %v410_v38  ;;  %v417_v4 = vld [vmem:[%s2389_s6 + $0x280] sm:$0xff]  ;;  %v418_v6 = vld [vmem:[%s2389_s6 + $0x288] sm:$0xff]  ;;  %v447_v7 = vld [vmem:[%s2389_s6 + $0x370] sm:$0xff] }
  0x95   : > { %657 = vmatpush.msra.mxu1 %v439_v39  ;;  %679 = vmatpush.msra.mxu2 %v378_v40  ;;  %v349_v5 = vld [vmem:[%s2389_s6 + $0x60] sm:$0xff]  ;;  %v386_v8 = vld [vmem:[%s2389_s6 + $0x188] sm:$0xff]  ;;  %v387_v9 = vld [vmem:[%s2389_s6 + $0x190] sm:$0xff] }
  0x96   : > { %1853 = vmatmul.msk.f32.vlgmr.msrb.gmra.mxu0 %vm461_vm1, %v2418_v15  ;;  %699 = vmatpush.msra.mxu3 %v379_v41  ;;  %v446_v10 = vld [vmem:[%s2389_s6 + $0x368] sm:$0xff]  ;;  %v416_v11 = vld [vmem:[%s2389_s6 + $0x278] sm:$0xff]  ;;  %v355_v12 = vld [vmem:[%s2389_s6 + $0x90] sm:$0xff] }
  0x97   : > { %637 = vmatpush.msra.mxu0 %v438_v42  ;;  %658 = vmatpush.msra.mxu1 %v408_v43  ;;  %v356_v13 = vld [vmem:[%s2389_s6 + $0x98] sm:$0xff]  ;;  %v415_v14 = vld [vmem:[%s2389_s6 + $0x270] sm:$0xff]  ;;  %v385_v16 = vld [vmem:[%s2389_s6 + $0x180] sm:$0xff] }
  0x98   : > { %680 = vmatpush.msra.mxu2 %v347_v44  ;;  %700 = vmatpush.msra.mxu3 %v348_v45  ;;  %v452_v17 = vld [vmem:[%s2389_s6 + $0x398] sm:$0xff]  ;;  %v453_v19 = vld [vmem:[%s2389_s6 + $0x3a0] sm:$0xff]  ;;  %v354_v20 = vld [vmem:[%s2389_s6 + $0x88] sm:$0xff] }
  0x99   : > { %638 = vmatpush.msra.mxu0 %v407_v46  ;;  %659 = vmatpush.msra.mxu1 %v377_v47  ;;  %v384_v18 = vld [vmem:[%s2389_s6 + $0x178] sm:$0xff]  ;;  %v421_v21 = vld [vmem:[%s2389_s6 + $0x2a0] sm:$0xff]  ;;  %v422_v23 = vld [vmem:[%s2389_s6 + $0x2a8] sm:$0xff] }
  0x9a   : > { %1859 = vmatmul.msk.f32.vlgmr.msra.gmra.mxu2 %vm461_vm1, %v2418_v15  ;;  %1860 = vmatmul.msk.f32.vlgmr.msra.gmra.mxu3 %vm461_vm1, %v2418_v15  ;;  %v353_v22 = vld [vmem:[%s2389_s6 + $0x80] sm:$0xff]  ;;  %v451_v24 = vld [vmem:[%s2389_s6 + $0x390] sm:$0xff]  ;;  %v390_v25 = vld [vmem:[%s2389_s6 + $0x1a8] sm:$0xff] }
  0x9b   : > { %757 = vmatpush.msrb.mxu2 %v444_v48  ;;  %639 = vmatpush.msra.mxu0 %v376_v49  ;;  %v391_v26 = vld [vmem:[%s2389_s6 + $0x1b0] sm:$0xff]  ;;  %v450_v27 = vld [vmem:[%s2389_s6 + $0x388] sm:$0xff]  ;;  %v420_v28 = vld [vmem:[%s2389_s6 + $0x298] sm:$0xff] }
  0x9c   : > { %777 = vmatpush.msrb.mxu3 %v445_v50  ;;  %660 = vmatpush.msra.mxu1 %v346_v51  ;;  %v359_v29 = vld [vmem:[%s2389_s6 + $0xb0] sm:$0xff]  ;;  %v360_v30 = vld [vmem:[%s2389_s6 + $0xb8] sm:$0xff]  ;;  %v389_v32 = vld [vmem:[%s2389_s6 + $0x1a0] sm:$0xff] }
  0x9d   : > { %758 = vmatpush.msrb.mxu2 %v413_v52  ;;  %640 = vmatpush.msra.mxu0 %v345_v53  ;;  %v419_v31 = vld [vmem:[%s2389_s6 + $0x290] sm:$0xff]  ;;  %v456_v33 = vld [vmem:[%s2389_s6 + $0x3b8] sm:$0xff]  ;;  %v457_v35 = vld [vmem:[%s2389_s6 + $0x3c0] sm:$0xff] }
  0x9e   : > { %1858 = vmatmul.msk.f32.vlgmr.msra.gmra.mxu1 %vm461_vm1, %v2418_v15  ;;  %778 = vmatpush.msrb.mxu3 %v414_v54  ;;  %v388_v34 = vld [vmem:[%s2389_s6 + $0x198] sm:$0xff]  ;;  %v358_v36 = vld [vmem:[%s2389_s6 + $0xa8] sm:$0xff]  ;;  %v425_v37 = vld [vmem:[%s2389_s6 + $0x2c0] sm:$0xff] }
  0x9f   : > { %737 = vmatpush.msrb.mxu1 %v443_v55  ;;  %759 = vmatpush.msrb.mxu2 %v382_v56  ;;  %v357_v38 = vld [vmem:[%s2389_s6 + $0xa0] sm:$0xff]  ;;  %v426_v39 = vld [vmem:[%s2389_s6 + $0x2c8] sm:$0xff]  ;;  %v455_v40 = vld [vmem:[%s2389_s6 + $0x3b0] sm:$0xff] }
  0xa0   : > { %1857 = vmatmul.msk.f32.vlgmr.msra.gmra.mxu0 %vm461_vm1, %v2418_v15  ;;  %779 = vmatpush.msrb.mxu3 %v383_v57  ;;  %v394_v41 = vld [vmem:[%s2389_s6 + $0x1c8] sm:$0xff]  ;;  %v395_v42 = vld [vmem:[%s2389_s6 + $0x1d0] sm:$0xff]  ;;  %v424_v44 = vld [vmem:[%s2389_s6 + $0x2b8] sm:$0xff] }
  0xa1   : > { %717 = vmatpush.msrb.mxu0 %v442_v58  ;;  %738 = vmatpush.msrb.mxu1 %v412_v59  ;;  %v454_v43 = vld [vmem:[%s2389_s6 + $0x3a8] sm:$0xff]  ;;  %v363_v45 = vld [vmem:[%s2389_s6 + $0xd0] sm:$0xff]  ;;  %v364_v46 = vld [vmem:[%s2389_s6 + $0xd8] sm:$0xff] }
  0xa2   : > { %760 = vmatpush.msrb.mxu2 %v351_v60  ;;  %780 = vmatpush.msrb.mxu3 %v352_v61  ;;  %v423_v47 = vld [vmem:[%s2389_s6 + $0x2b0] sm:$0xff]  ;;  %v393_v48 = vld [vmem:[%s2389_s6 + $0x1c0] sm:$0xff]  ;;  %v460_v49 = vld [vmem:[%s2389_s6 + $0x3d8] sm:$0xff] }
  0xa3   : > { %718 = vmatpush.msrb.mxu0 %v411_v62  ;;  %739 = vmatpush.msrb.mxu1 %v381_v63  ;;  %v392_v50 = vld [vmem:[%s2389_s6 + $0x1b8] sm:$0xff]  ;;  %v362_v51 = vld [vmem:[%s2389_s6 + $0xc8] sm:$0xff]  ;;  %v429_v52 = vld [vmem:[%s2389_s6 + $0x2e0] sm:$0xff] }
  0xa4   : > { %1863 = vmatmul.msk.f32.vlgmr.msrb.gmra.mxu2 %vm461_vm1, %v2418_v15  ;;  %1864 = vmatmul.msk.f32.vlgmr.msrb.gmra.mxu3 %vm461_vm1, %v2418_v15  ;;  %v361_v53 = vld [vmem:[%s2389_s6 + $0xc0] sm:$0xff]  ;;  %v398_v54 = vld [vmem:[%s2389_s6 + $0x1e8] sm:$0xff]  ;;  %v459_v56 = vld [vmem:[%s2389_s6 + $0x3d0] sm:$0xff] }
  0xa5   : > { %837 = vmatpush.msra.mxu2 %v448_v0  ;;  %719 = vmatpush.msrb.mxu0 %v380_v1  ;;  %v458_v55 = vld [vmem:[%s2389_s6 + $0x3c8] sm:$0xff]  ;;  %v367_v57 = vld [vmem:[%s2389_s6 + $0xf0] sm:$0xff]  ;;  %v428_v59 = vld [vmem:[%s2389_s6 + $0x2d8] sm:$0xff]  ;;  %v1088_v0 = vlaneseq }
  0xa6   : > { %857 = vmatpush.msra.mxu3 %v449_v2  ;;  %740 = vmatpush.msrb.mxu1 %v350_v3  ;;  %v427_v58 = vld [vmem:[%s2389_s6 + $0x2d0] sm:$0xff]  ;;  %v396_v60 = vld [vmem:[%s2389_s6 + $0x1d8] sm:$0xff]  ;;  %v397_v61 = vld [vmem:[%s2389_s6 + $0x1e0] sm:$0xff]  ;;  %v2598_v3 = vstv %s1087_s5 }
  0xa7   : > { %838 = vmatpush.msra.mxu2 %v417_v4  ;;  %720 = vmatpush.msrb.mxu0 %v349_v5  ;;  %v365_v62 = vld [vmem:[%s2389_s6 + $0xe0] sm:$0xff]  ;;  %v366_v63 = vld [vmem:[%s2389_s6 + $0xe8] sm:$0xff]  ;;  %v2594_v1 = vand.u32 127, %v1088_v0 }
  0xa8   : > { %1862 = vmatmul.msk.f32.vlgmr.msrb.gmra.mxu1 %vm461_vm1, %v2418_v15  ;;  %858 = vmatpush.msra.mxu3 %v418_v6 }
  0xa9   : > { %817 = vmatpush.msra.mxu1 %v447_v7  ;;  %839 = vmatpush.msra.mxu2 %v386_v8  ;;  %v1090_v2 = vadd.s32 128, %v2594_v1  ;;  %v1091_v4 = vadd.s32 256, %v2594_v1  ;;  %v1092_v6 = vadd.s32 384, %v2594_v1  ;;  %v2607_v7 = vadd.s32 %v2598_v3, %v2594_v1 }
  0xaa   : > { %1861 = vmatmul.msk.f32.vlgmr.msrb.gmra.mxu0 %vm461_vm1, %v2418_v15  ;;  %859 = vmatpush.msra.mxu3 %v387_v9  ;;  %v1094_v8 = vadd.s32 640, %v2594_v1 }
  0xab   : > { %797 = vmatpush.msra.mxu0 %v446_v10  ;;  %818 = vmatpush.msra.mxu1 %v416_v11  ;;  %v2602_v5 = vadd.s32 %v2598_v3, %v1090_v2  ;;  %v2615_v9 = vadd.s32 %v2598_v3, %v1092_v6  ;;  %v1093_v10 = vadd.s32 512, %v2594_v1  ;;  %vm1152_vm3 = vcmp.lt.s32.totalorder %v2607_v7, 4000 }
  0xac   : > { %840 = vmatpush.msra.mxu2 %v355_v12  ;;  %860 = vmatpush.msra.mxu3 %v356_v13  ;;  %v2623_v13 = vadd.s32 %v2598_v3, %v1094_v8 }
  0xad   : > { %798 = vmatpush.msra.mxu0 %v415_v14  ;;  %819 = vmatpush.msra.mxu1 %v385_v16  ;;  %vm1153_vm2 = vcmp.lt.s32.totalorder %v2602_v5, 4000  ;;  %v1095_v14 = vadd.s32 768, %v2594_v1  ;;  %v1096_v16 = vadd.s32 896, %v2594_v1  ;;  %vm1155_vm5 = vcmp.lt.s32.totalorder %v2615_v9, 4000 }
  0xae   : > { %1867 = vmatmul.msk.f32.vlgmr.msra.gmra.mxu2 %vm461_vm1, %v2418_v15  ;;  %1868 = vmatmul.msk.f32.vlgmr.msra.gmra.mxu3 %vm461_vm1, %v2418_v15  ;;  %vm1157_vm8 = vcmp.lt.s32.totalorder %v2623_v13, 4000 }
  0xaf   : > { %917 = vmatpush.msrb.mxu2 %v452_v17  ;;  %799 = vmatpush.msra.mxu0 %v384_v18 }
  0xb0   : > { %937 = vmatpush.msrb.mxu3 %v453_v19  ;;  %820 = vmatpush.msra.mxu1 %v354_v20  ;;  %v2629_v20 = vadd.s32 %v2598_v3, %v1093_v10 }
  0xb1   : > { %918 = vmatpush.msrb.mxu2 %v421_v21  ;;  %800 = vmatpush.msra.mxu0 %v353_v22  ;;  %v1098_v21 = vadd.s32 1152, %v2594_v1 }
  0xb2   : > { %1866 = vmatmul.msk.f32.vlgmr.msra.gmra.mxu1 %vm461_vm1, %v2418_v15  ;;  %938 = vmatpush.msrb.mxu3 %v422_v23  ;;  %vm1156_vm9 = vcmp.lt.s32.totalorder %v2629_v20, 4000 }
  0xb3   : > { %897 = vmatpush.msrb.mxu1 %v451_v24  ;;  %919 = vmatpush.msrb.mxu2 %v390_v25 }
  0xb4   : > { %1865 = vmatmul.msk.f32.vlgmr.msra.gmra.mxu0 %vm461_vm1, %v2418_v15  ;;  %939 = vmatpush.msrb.mxu3 %v391_v26  ;;  %v2638_v26 = vadd.s32 %v2598_v3, %v1095_v14 }
  0xb5   : > { %877 = vmatpush.msrb.mxu0 %v450_v27  ;;  %898 = vmatpush.msrb.mxu1 %v420_v28  ;;  %v2641_v27 = vadd.s32 %v2598_v3, %v1096_v16 }
  0xb6   : > { %920 = vmatpush.msrb.mxu2 %v359_v29  ;;  %940 = vmatpush.msrb.mxu3 %v360_v30  ;;  %v1097_v30 = vadd.s32 1024, %v2594_v1  ;;  %vm1158_vm11 = vcmp.lt.s32.totalorder %v2638_v26, 4000 }
  0xb7   : > { %878 = vmatpush.msrb.mxu0 %v419_v31  ;;  %899 = vmatpush.msrb.mxu1 %v389_v32  ;;  %v2648_v32 = vadd.s32 %v2598_v3, %v1098_v21  ;;  %vm1159_vm12 = vcmp.lt.s32.totalorder %v2641_v27, 4000  ;;  %v1106_v21 = vadd.s32 2176, %v2594_v1 }
  0xb8   : > { %1871 = vmatmul.msk.f32.vlgmr.msrb.gmra.mxu2 %vm461_vm1, %v2418_v15  ;;  %1872 = vmatmul.msk.f32.vlgmr.msrb.gmra.mxu3 %vm461_vm1, %v2418_v15 }
  0xb9   : > { %997 = vmatpush.msra.mxu2 %v456_v33  ;;  %879 = vmatpush.msrb.mxu0 %v388_v34  ;;  %v1099_v33 = vadd.s32 1280, %v2594_v1 }
  0xba   : > { %1017 = vmatpush.msra.mxu3 %v457_v35  ;;  %900 = vmatpush.msrb.mxu1 %v358_v36  ;;  %v1100_v35 = vadd.s32 1408, %v2594_v1 }
  0xbb   : > { %998 = vmatpush.msra.mxu2 %v425_v37  ;;  %880 = vmatpush.msrb.mxu0 %v357_v38  ;;  %v2655_v38 = vadd.s32 %v2598_v3, %v1097_v30 }
  0xbc   : > { %1870 = vmatmul.msk.f32.vlgmr.msrb.gmra.mxu1 %vm461_vm1, %v2418_v15  ;;  %1018 = vmatpush.msra.mxu3 %v426_v39 }
  0xbd   : > { %977 = vmatpush.msra.mxu1 %v455_v40  ;;  %999 = vmatpush.msra.mxu2 %v394_v41  ;;  %v2659_v40 = vadd.s32 %v2598_v3, %v1099_v33 }
  0xbe   : > { %1869 = vmatmul.msk.f32.vlgmr.msrb.gmra.mxu0 %vm461_vm1, %v2418_v15  ;;  %1019 = vmatpush.msra.mxu3 %v395_v42 }
  0xbf   : > { %957 = vmatpush.msra.mxu0 %v454_v43  ;;  %978 = vmatpush.msra.mxu1 %v424_v44  ;;  %v2665_v44 = vadd.s32 %v2598_v3, %v1100_v35  ;;  %vm1162_vm0 = vcmp.lt.s32.totalorder %v2659_v40, 4000 }
  0xc0   : > { %1000 = vmatpush.msra.mxu2 %v363_v45  ;;  %1020 = vmatpush.msra.mxu3 %v364_v46  ;;  %v1102_v45 = vadd.s32 1664, %v2594_v1 }
  0xc1   : > { %958 = vmatpush.msra.mxu0 %v423_v47  ;;  %979 = vmatpush.msra.mxu1 %v393_v48 }
  0xc2   : > { %1875 = vmatmul.msk.f32.vlgmr.msra.gmra.mxu2 %vm461_vm1, %v2418_v15  ;;  %1876 = vmatmul.msk.f32.vlgmr.msra.gmra.mxu3 %vm461_vm1, %v2418_v15 }
  0xc3   : > { %1077 = vmatpush.msrb.mxu2 %v460_v49  ;;  %959 = vmatpush.msra.mxu0 %v392_v50  ;;  %v1101_v49 = vadd.s32 1536, %v2594_v1  ;;  %v1103_v50 = vadd.s32 1792, %v2594_v1 }
  0xc4   : > { %980 = vmatpush.msra.mxu1 %v362_v51  ;;  %v1104_v51 = vadd.s32 1920, %v2594_v1 }
  0xc5   : > { %1078 = vmatpush.msrb.mxu2 %v429_v52  ;;  %960 = vmatpush.msra.mxu0 %v361_v53 }
  0xc6   : > { %1874 = vmatmul.msk.f32.vlgmr.msra.gmra.mxu1 %vm461_vm1, %v2418_v15  ;;  %1873 = vmatmul.msk.f32.vlgmr.msra.gmra.mxu0 %vm461_vm1, %v2418_v15  ;;  %v2706_v35 = vadd.s32 %v2598_v3, %v1104_v51 }
  0xc7   : > { %1079 = vmatpush.msrb.mxu2 %v398_v54  ;;  %1037 = vmatpush.msrb.mxu0 %v458_v55 }
  0xc8   : > { %1057 = vmatpush.msrb.mxu1 %v459_v56 }
  0xc9   : > { %1080 = vmatpush.msrb.mxu2 %v367_v57  ;;  %1038 = vmatpush.msrb.mxu0 %v427_v58 }
  0xca   : > { %1058 = vmatpush.msrb.mxu1 %v428_v59  ;;  %1879 = vmatmul.msk.f32.vlgmr.msrb.gmra.mxu2 %vm461_vm1, %v2418_v15 }
  0xcb   : > { %1039 = vmatpush.msrb.mxu0 %v396_v60 }
  0xcc   : > { %1059 = vmatpush.msrb.mxu1 %v397_v61 }
  0xcd   : > { %1040 = vmatpush.msrb.mxu0 %v365_v62 }
  0xce   : > { %1060 = vmatpush.msrb.mxu1 %v366_v63  ;;  %1877 = vmatmul.msk.f32.vlgmr.msrb.gmra.mxu0 %vm461_vm1, %v2418_v15 }
  0xcf   : > { %1878 = vmatmul.msk.f32.vlgmr.msrb.gmra.mxu1 %vm461_vm1, %v2418_v15  ;;  %v2610_v15 = vadd.s32 %v2598_v3, %v1091_v4  ;;  %vm3143_vm1 = vcmp.lt.s32.totalorder %v2655_v38, 4000 }
  0xd1   : > { %vm1154_vm4 = vcmp.lt.s32.totalorder %v2610_v15, 4000 }
 0x106   : > { %v502_v11 = vpop.f32.mrf.mxu1 }
 0x107   : > { %v1184_v12 = vsel %vm1153_vm2, %v502_v11, 0.0 }
 0x108   : > { %v1216_v17 = vmul.f32 1.442695, %v1184_v12  ;;  %v1342_v34 = vrot.slane %v1184_v12, 7 }
 0x109   : > { %v482_v18 = vpop.f32.mrf.mxu0  ;;  %v522_v19 = vpop.f32.mrf.mxu2 }
 0x10a   : > { %v1183_v22 = vsel %vm1152_vm3, %v482_v18, 0.0  ;;  %v1185_v23 = vsel %vm1154_vm4, %v522_v19, 0.0  ;;  %v542_v24 = vpop.f32.mrf.mxu3  ;;  %1960 = vpow2.f32 %v1216_v17  ;;  %v2690_v19 = vadd.s32 %v2598_v3, %v1102_v45 }
 0x10b   : > { %v1218_v25 = vmul.f32 1.442695, %v1185_v23  ;;  %v1214_v28 = vmul.f32 1.442695, %v1183_v22  ;;  %v1186_v29 = vsel %vm1155_vm5, %v542_v24, 0.0  ;;  %v1343_v36 = vrot.slane %v1185_v23, 6 }
 0x10c   : > { %v1220_v31 = vmul.f32 1.442695, %v1186_v29  ;;  %v1344_v37 = vrot.slane %v1186_v29, 5  ;;  %v1370_v42 = vsel %vm1369_vm6, %v1183_v22, %v1342_v34  ;;  %v1307_v22 = vld [vmem:[%s2395_s15] sm:$0xff]  ;;  %v2696_v24 = vadd.s32 %v2598_v3, %v1101_v49 }
 0x10d   : > { %1962 = vpow2.f32 %v1218_v25  ;;  %v2699_v25 = vadd.s32 %v2598_v3, %v1103_v50 }
 0x10e   : > { %1964 = vpow2.f32 %v1220_v31  ;;  %v1372_v53 = vsel %vm1371_vm7, %v1343_v36, %v1344_v37 }
 0x10f   : > { %1966 = vpow2.f32 %v1214_v28  ;;  %v1105_v28 = vadd.s32 2048, %v2594_v1  ;;  %v1374_v30 = vsel %vm3145_vm14, %v1370_v42, %v1372_v53  ;;  %v1108_v53 = vadd.s32 2432, %v2594_v1 }
 0x110   : > { %v1961_v41 = vpop.eup %1960 }
 0x111   : > { %v582_v39 = vpop.f32.mrf.mxu1  ;;  %v1277_v59 = vsel %vm1153_vm2, %v1961_v41, 0.0  ;;  %v2769_v26 = vadd.s32 %v2598_v3, %v1108_v53 }
 0x112   : > { %v1188_v43 = vsel %vm1157_vm8, %v582_v39, 0.0  ;;  %v1648_v12 = vrot.slane %v1277_v59, 7 }
 0x113   : > { %v1224_v46 = vmul.f32 1.442695, %v1188_v43  ;;  %v562_v47 = vpop.f32.mrf.mxu0  ;;  %v602_v48 = vpop.f32.mrf.mxu2  ;;  %v1346_v54 = vrot.slane %v1188_v43, 3 }
 0x114   : > { %v1963_v52 = vpop.eup %1962  ;;  %v1187_v55 = vsel %vm1156_vm9, %v562_v47, 0.0  ;;  %v1189_v56 = vsel %vm1158_vm11, %v602_v48, 0.0  ;;  %v622_v57 = vpop.f32.mrf.mxu3  ;;  %v2719_v47 = vadd.s32 %v2598_v3, %v1106_v21  ;;  %v1107_v48 = vadd.s32 2304, %v2594_v1 }
 0x115   : > { %v1965_v58 = vpop.eup %1964  ;;  %v1278_v60 = vsel %vm1154_vm4, %v1963_v52, 0.0  ;;  %1968 = vpow2.f32 %v1224_v46  ;;  %v1222_v61 = vmul.f32 1.442695, %v1187_v55  ;;  %v1345_v4 = vrot.slane %v1187_v55, 4 }
 0x116   : > { %v1967_v62 = vpop.eup %1966  ;;  %v1649_v63 = vrot.slane %v1278_v60, 6  ;;  %v1279_v2 = vsel %vm1155_vm5, %v1965_v58, 0.0  ;;  %v1226_v6 = vmul.f32 1.442695, %v1189_v56  ;;  %v1347_v10 = vrot.slane %v1189_v56, 2 }
 0x117   : > { %v1650_v8 = vrot.slane %v1279_v2, 5  ;;  %1970 = vpow2.f32 %v1222_v61  ;;  %v1190_v11 = vsel %vm1159_vm12, %v622_v57, 0.0  ;;  %v1376_v14 = vsel %vm3142_vm10, %v1345_v4, %v1346_v54 }
 0x118   : > { %1972 = vpow2.f32 %v1226_v6  ;;  %v1348_v16 = vrot.slane %v1190_v11, 1  ;;  %v1276_v17 = vsel %vm1152_vm3, %v1967_v62, 0.0  ;;  %v1228_v18 = vmul.f32 1.442695, %v1190_v11 }
 0x119   : > { %v1676_v31 = vsel %vm1371_vm7, %v1649_v63, %v1650_v8  ;;  %v1675_v36 = vsel %vm1369_vm6, %v1276_v17, %v1648_v12  ;;  %vm3151_vm10 = vcmp.lt.s32.totalorder %v2648_v32, 4000  ;;  %v2728_v52 = vadd.s32 %v2598_v3, %v1105_v28 }
 0x11a   : > { %v1378_v23 = vsel %vm3141_vm13, %v1347_v10, %v1348_v16  ;;  %vm3150_vm13 = vcmask 1043456   ;;  %1974 = vpow2.f32 %v1228_v18  ;;  %v2723_v50 = vsel %vm3145_vm14, %v1675_v36, %v1676_v31 }
 0x11b   : > { %v1969_v29 = vpop.eup %1968  ;;  %v1380_v33 = vsel %vm3144_vm15, %v1376_v14, %v1378_v23  ;;  %v662_v34 = vpop.f32.mrf.mxu1  ;;  %vm1166_vm15 = vcmp.lt.s32.totalorder %v2699_v25, 4000  ;;  %vm1167_vm14 = vcmp.lt.s32.totalorder %v2706_v35, 4000  ;;  %v2766_v13 = vadd.s32 %v2598_v3, %v1107_v48 }
 0x11c   : > { %v2711_v37 = vsel %vm1157_vm8, %v1969_v29, 0.0  ;;  %v1382_v39 = vsel %vm3150_vm13, %v1374_v30, %v1380_v33  ;;  %v2716_v41 = vsel %vm3151_vm10, %v662_v34, 0.0  ;;  %vm1163_vm10 = vcmp.lt.s32.totalorder %v2665_v44, 4000 }
 0x11d   : > { %v1971_v42 = vpop.eup %1970  ;;  %v1407_v43 = vmul.f32 %v1382_v39, %v1307_v22  ;;  %v642_v45 = vpop.f32.mrf.mxu0  ;;  %v1652_v54 = vrot.slane %v2711_v37, 3  ;;  %v1232_v56 = vmul.f32 1.442695, %v2716_v41  ;;  %vm1165_vm13 = vcmp.lt.s32.totalorder %v2690_v19, 4000 }
 0x11e   : > { %v682_v46 = vpop.f32.mrf.mxu2  ;;  %v1973_v49 = vpop.eup %1972  ;;  %v1280_v51 = vsel %vm1156_vm9, %v1971_v42, 0.0  ;;  %v2735_v57 = vsel %vm3143_vm1, %v642_v45, 0.0  ;;  %vm1164_vm1 = vcmp.lt.s32.totalorder %v2696_v24, 4000  ;;  %v1349_v36 = vrot.slane %v2716_v41, 7 }
 0x11f   : > { %v1416_v55 = vperm.slane %v1407_v43, 1  ;;  %v702_v58 = vpop.f32.mrf.mxu3  ;;  %v1417_v59 = vperm.slane %v1407_v43, 2  ;;  %v1418_v60 = vperm.slane %v1407_v43, 3  ;;  %v1419_v61 = vperm.slane %v1407_v43, 4 }
 0x120   : > { %v2741_v62 = vsel %vm1162_vm0, %v682_v46, 0.0  ;;  %v1651_v63 = vrot.slane %v1280_v51, 4  ;;  %v1282_v2 = vsel %vm1158_vm11, %v1973_v49, 0.0  ;;  %v1420_v4 = vperm.slane %v1407_v43, 5  ;;  %v1975_v14 = vpop.eup %1974 }
 0x121   : > { %v1421_v6 = vperm.slane %v1407_v43, 6  ;;  %v1415_v8 = vperm.slane %v1407_v43, 0  ;;  %v1422_v10 = vperm.slane %v1407_v43, 7  ;;  %v1478_v11 = vsel %vm1153_vm2, %v1416_v55, 0.0 }
 0x122   : > { %v1479_v12 = vsel %vm1154_vm4, %v1417_v59, 0.0  ;;  %v1480_v16 = vsel %vm1155_vm5, %v1418_v60, 0.0  ;;  %v1481_v17 = vsel %vm1156_vm9, %v1419_v61, 0.0  ;;  %v1482_v18 = vsel %vm1157_vm8, %v1420_v4, 0.0 }
 0x123   : > { %v1483_v21 = vsel %vm1158_vm11, %v1421_v6, 0.0  ;;  %v1484_v5 = vsel %vm1159_vm12, %v1422_v10, 0.0  ;;  %v1543_v22 = vrot.slane %v1478_v11, 7  ;;  %v1544_v23 = vrot.slane %v1479_v12, 6 }
 0x124   : > { %v1545_v15 = vrot.slane %v1480_v16, 5  ;;  %v1546_v28 = vrot.slane %v1481_v17, 4  ;;  %v1547_v29 = vrot.slane %v1482_v18, 3  ;;  %v1548_v30 = vrot.slane %v1483_v21, 2 }
 0x125   : > { %v1549_v9 = vrot.slane %v1484_v5, 1  ;;  %v742_v31 = vpop.f32.mrf.mxu1  ;;  %v1283_v20 = vsel %vm1159_vm12, %v1975_v14, 0.0  ;;  %vm1169_vm2 = vcmp.lt.s32.totalorder %v2719_v47, 4000  ;;  %v1653_v33 = vrot.slane %v1282_v2, 2 }
 0x126   : > { %v1477_v34 = vsel %vm1152_vm3, %v1415_v8, 0.0  ;;  %v1230_v37 = vmul.f32 1.442695, %v2735_v57  ;;  %vm3152_vm4 = vcmask 1044484   ;;  %v1571_v45 = vsel %vm1371_vm7, %v1544_v23, %v1545_v15 }
 0x127   : > { %v722_v39 = vpop.f32.mrf.mxu0  ;;  %v762_v42 = vpop.f32.mrf.mxu2  ;;  %v1678_v27 = vsel %vm3152_vm4, %v1651_v63, %v1652_v54  ;;  %v1570_v43 = vsel %vm1369_vm6, %v1477_v34, %v1543_v22  ;;  %v1234_v46 = vmul.f32 1.442695, %v2741_v62  ;;  %vm1168_vm5 = vcmp.lt.s32.totalorder %v2728_v52, 4000  ;;  %vm3153_vm8 = vmmov %vm3152_vm4 }
 0x128   : > { %v1573_v48 = vsel %vm3153_vm8, %v1546_v28, %v1547_v29  ;;  %vm3154_vm9 = vcmask 1046534   ;;  %v1654_v49 = vrot.slane %v1283_v20, 1  ;;  %1976 = vpow2.f32 %v1232_v56  ;;  %v782_v41 = vpop.f32.mrf.mxu3  ;;  %v1308_v20 = vld [vmem:[%s2395_s15 + $0x8] sm:$0xff] }
 0x129   : > { %v1574_v7 = vsel %vm3154_vm9, %v1548_v30, %v1549_v9  ;;  %1978 = vpow2.f32 %v1234_v46  ;;  %v1350_v51 = vrot.slane %v2741_v62, 6  ;;  %v1194_v53 = vsel %vm1163_vm10, %v702_v58, 0.0  ;;  %vm3157_vm12 = vmmov %vm3154_vm9 }
 0x12a   : > { %v1196_v54 = vsel %vm1165_vm13, %v742_v31, 0.0  ;;  %1980 = vpow2.f32 %v1230_v37  ;;  %v1236_v55 = vmul.f32 1.442695, %v1194_v53  ;;  %v1351_v59 = vrot.slane %v1194_v53, 5 }
 0x12b   : > { %v1240_v60 = vmul.f32 1.442695, %v1196_v54  ;;  %v1353_v61 = vrot.slane %v1196_v54, 3  ;;  %v1195_v63 = vsel %vm1164_vm1, %v722_v39, 0.0  ;;  %v1197_v56 = vsel %vm1166_vm15, %v762_v42, 0.0 }
 0x12c   : > { %v1198_v62 = vsel %vm1167_vm14, %v782_v41, 0.0  ;;  %vm3155_vm3 = vcmask 1041408   ;;  %vm3156_vm11 = vcmask 1045508   ;;  %1982 = vpow2.f32 %v1236_v55 }
 0x12d   : > { %v1572_v2 = vsel %vm3155_vm3, %v1570_v43, %v1571_v45  ;;  %v1575_v58 = vsel %vm3156_vm11, %v1573_v48, %v1574_v7  ;;  %v1238_v4 = vmul.f32 1.442695, %v1195_v63  ;;  %v1679_v6 = vsel %vm3157_vm12, %v1653_v33, %v1654_v49  ;;  %vm3159_vm9 = vmmov %vm3156_vm11 }
 0x12e   : > { %v1384_v8 = vsel %vm1371_vm7, %v1350_v51, %v1351_v59  ;;  %1984 = vpow2.f32 %v1240_v60  ;;  %v1352_v10 = vrot.slane %v1195_v63, 4  ;;  %v1977_v11 = vpop.eup %1976  ;;  %v1242_v12 = vmul.f32 1.442695, %v1197_v56 }
 0x12f   : > { %1986 = vpow2.f32 %v1238_v4  ;;  %v1354_v14 = vrot.slane %v1197_v56, 2  ;;  %v1244_v16 = vmul.f32 1.442695, %v1198_v62  ;;  %v822_v17 = vpop.f32.mrf.mxu1  ;;  %v1979_v18 = vpop.eup %1978  ;;  %v1383_v21 = vsel %vm1369_vm6, %v2735_v57, %v1349_v36 }
 0x130   : > { %v1386_v5 = vsel %vm3152_vm4, %v1352_v10, %v1353_v61  ;;  %v1355_v22 = vrot.slane %v1198_v62, 1  ;;  %v2802_v23 = vsel %vm1169_vm2, %v822_v17, 0.0  ;;  %v1981_v15 = vpop.eup %1980  ;;  %vm3158_vm8 = vcmask 1043456  }
 0x131   : > { %v2805_v28 = vsel %vm3158_vm8, %v1572_v2, %v1575_v58  ;;  %v1680_v29 = vsel %vm3159_vm9, %v1678_v27, %v1679_v6  ;;  %1988 = vpow2.f32 %v1242_v12  ;;  %v802_v30 = vpop.f32.mrf.mxu0  ;;  %v842_v9 = vpop.f32.mrf.mxu2  ;;  %vm1170_vm3 = vcmp.lt.s32.totalorder %v2766_v13, 4000  ;;  %vm3163_vm8 = vmmov %vm3159_vm9 }
 0x132   : > { %vm3160_vm11 = vcmp.lt.s32.totalorder %v2648_v32, 4000  ;;  %vm3161_vm12 = vcmask 1041408   ;;  %1990 = vpow2.f32 %v1244_v16  ;;  %vm3162_vm4 = vcmask 1046534   ;;  %v1983_v34 = vpop.eup %1982  ;;  %v862_v25 = vpop.f32.mrf.mxu3 }
 0x133   : > { %v1285_v57 = vsel %vm3160_vm11, %v1977_v11, 0.0  ;;  %v1385_v31 = vsel %vm3161_vm12, %v1383_v21, %v1384_v8  ;;  %v1387_v33 = vsel %vm3162_vm4, %v1354_v14, %v1355_v22  ;;  %v1286_v36 = vsel %vm1162_vm0, %v1979_v18, 0.0 }
 0x134   : > { %v1388_v37 = vsel %vm3163_vm8, %v1386_v5, %v1387_v33  ;;  %v1248_v39 = vmul.f32 1.442695, %v2802_v23  ;;  %v1199_v42 = vsel %vm1168_vm5, %v802_v30, 0.0  ;;  %v1985_v27 = vpop.eup %1984  ;;  %v1287_v43 = vsel %vm1163_vm10, %v1983_v34, 0.0 }
 0x135   : > { %vm3164_vm9 = vcmask 1043456   ;;  %v1246_v46 = vmul.f32 1.442695, %v1199_v42  ;;  %v2825_v48 = vsel %vm1170_vm3, %v842_v9, 0.0  ;;  %v1987_v7 = vpop.eup %1986  ;;  %v1655_v41 = vrot.slane %v1285_v57, 7 }
 0x136   : > { %v1389_v45 = vsel %vm3164_vm9, %v1385_v31, %v1388_v37  ;;  %vm3165_vm11 = vmmov %vm3164_vm9  ;;  %v1289_v51 = vsel %vm1165_vm13, %v1985_v27, 0.0  ;;  %vm3166_vm12 = vcmp.lt.s32.totalorder %v2655_v38, 4000  ;;  %v1656_v55 = vrot.slane %v1286_v36, 6 }
 0x137   : > { %v2829_v49 = vsel %vm3165_vm11, %v2723_v50, %v1680_v29  ;;  %v1408_v53 = vmul.f32 %v1389_v45, %v1308_v20  ;;  %v1284_v54 = vsel %vm3166_vm12, %v1981_v15, 0.0  ;;  %v1288_v59 = vsel %vm1164_vm1, %v1987_v7, 0.0  ;;  %v1989_v61 = vpop.eup %1988 }
 0x138   : > { %v1356_v60 = vrot.slane %v2802_v23, 7  ;;  %v1657_v63 = vrot.slane %v1287_v43, 5  ;;  %1992 = vpow2.f32 %v1248_v39  ;;  %v1250_v50 = vmul.f32 1.442695, %v2825_v48  ;;  %v1991_v62 = vpop.eup %1990 }
 0x139   : > { %v1424_v56 = vperm.slane %v1408_v53, 1  ;;  %v1659_v2 = vrot.slane %v1289_v51, 3  ;;  %v1425_v58 = vperm.slane %v1408_v53, 2  ;;  %v1426_v4 = vperm.slane %v1408_v53, 3  ;;  %v902_v7 = vpop.f32.mrf.mxu1 }
 0x13a   : > { %1994 = vpow2.f32 %v1246_v46  ;;  %v1658_v6 = vrot.slane %v1288_v59, 4  ;;  %v1290_v8 = vsel %vm1166_vm15, %v1989_v61, 0.0  ;;  %v1423_v10 = vperm.slane %v1408_v53, 0 }
 0x13b   : > { %v1427_v11 = vperm.slane %v1408_v53, 4  ;;  %v1291_v12 = vsel %vm1167_vm14, %v1991_v62, 0.0  ;;  %v1428_v14 = vperm.slane %v1408_v53, 5  ;;  %v1429_v16 = vperm.slane %v1408_v53, 6 }
 0x13c   : > { %v1430_v17 = vperm.slane %v1408_v53, 7  ;;  %vm3167_vm4 = vcmp.lt.s32.totalorder %v2648_v32, 4000  ;;  %v1487_v21 = vsel %vm1162_vm0, %v1425_v58, 0.0  ;;  %v1488_v5 = vsel %vm1163_vm10, %v1426_v4, 0.0  ;;  %vm3168_vm0 = vmmov %vm3166_vm12  ;;  %v922_v4 = vpop.f32.mrf.mxu2 }
 0x13d   : > { %v1486_v18 = vsel %vm3167_vm4, %v1424_v56, 0.0  ;;  %v1489_v22 = vsel %vm1164_vm1, %v1427_v11, 0.0  ;;  %v1490_v23 = vsel %vm1165_vm13, %v1428_v14, 0.0  ;;  %v1491_v15 = vsel %vm1166_vm15, %v1429_v16, 0.0 }
 0x13e   : > { %v1492_v29 = vsel %vm1167_vm14, %v1430_v17, 0.0  ;;  %v1550_v32 = vrot.slane %v1486_v18, 7  ;;  %v1993_v30 = vpop.eup %1992  ;;  %v1551_v9 = vrot.slane %v1487_v21, 6  ;;  %v1552_v40 = vrot.slane %v1488_v5, 5  ;;  %v942_v21 = vpop.f32.mrf.mxu3 }
 0x13f   : > { %v1553_v57 = vrot.slane %v1489_v22, 4  ;;  %v1554_v31 = vrot.slane %v1490_v23, 3  ;;  %v2858_v20 = vsel %vm1369_vm6, %v1284_v54, %v1655_v41  ;;  %v1485_v19 = vsel %vm3168_vm0, %v1423_v10, 0.0 }
 0x140   : > { %v1995_v44 = vpop.eup %1994  ;;  %v1555_v24 = vrot.slane %v1491_v15, 2  ;;  %v1556_v33 = vrot.slane %v1492_v29, 1  ;;  %v1660_v34 = vrot.slane %v1290_v8, 2  ;;  %v1577_v35 = vsel %vm1369_vm6, %v1485_v19, %v1550_v32 }
 0x141   : > { %v1578_v36 = vsel %vm1371_vm7, %v1551_v9, %v1552_v40  ;;  %v1661_v37 = vrot.slane %v1291_v12, 1  ;;  %v2865_v39 = vsel %vm1371_vm7, %v1656_v55, %v1657_v63  ;;  %vm3169_vm14 = vcmask 1044484  }
 0x142   : > { %v1685_v27 = vsel %vm3169_vm14, %v1658_v6, %v1659_v2  ;;  %v2869_v43 = vsel %vm1369_vm6, %v1199_v42, %v1356_v60  ;;  %v1357_v38 = vrot.slane %v2825_v48, 6  ;;  %vm3170_vm15 = vmmov %vm3169_vm14  ;;  %v2875_v46 = vsel %vm1169_vm2, %v1993_v30, 0.0  ;;  %v882_v2 = vpop.f32.mrf.mxu0 }
 0x143   : > { %v1580_v45 = vsel %vm3170_vm15, %v1553_v57, %v1554_v31  ;;  %1996 = vpow2.f32 %v1250_v50  ;;  %vm1171_vm1 = vcmp.lt.s32.totalorder %v2769_v26, 4000  ;;  %vm3171_vm10 = vcmask 1041408  }
 0x144   : > { %v1579_v41 = vsel %vm3171_vm10, %v1577_v35, %v1578_v36  ;;  %vm3172_vm13 = vcmask 1046534   ;;  %v2882_v42 = vsel %vm1168_vm5, %v1995_v44, 0.0  ;;  %v1202_v48 = vsel %vm1171_vm1, %v862_v25, 0.0  ;;  %v982_v44 = vpop.f32.mrf.mxu1 }
 0x145   : > { %v1581_v51 = vsel %vm3172_vm13, %v1555_v24, %v1556_v33  ;;  %vm3173_vm8 = vmmov %vm3172_vm13  ;;  %v1252_v54 = vmul.f32 1.442695, %v1202_v48  ;;  %v1110_v55 = vadd.s32 2688, %v2594_v1  ;;  %v1109_v59 = vadd.s32 2560, %v2594_v1 }
 0x146   : > { %v1686_v53 = vsel %vm3173_vm8, %v1660_v34, %v1661_v37  ;;  %v1662_v60 = vrot.slane %v2875_v46, 7  ;;  %v1111_v61 = vadd.s32 2816, %v2594_v1  ;;  %v1112_v63 = vadd.s32 2944, %v2594_v1 }
 0x147   : > { %v1114_v56 = vadd.s32 3200, %v2594_v1  ;;  %vm3174_vm9 = vcmask 1045508   ;;  %1998 = vpow2.f32 %v1252_v54  ;;  %v2895_v62 = vadd.s32 %v2598_v3, %v1110_v55 }
 0x148   : > { %v1582_v50 = vsel %vm3174_vm9, %v1580_v45, %v1581_v51  ;;  %v2898_v58 = vadd.s32 %v2598_v3, %v1109_v59  ;;  %vm3175_vm11 = vmmov %vm3174_vm9  ;;  %v2902_v8 = vadd.s32 %v2598_v3, %v1111_v61  ;;  %v2905_v10 = vadd.s32 %v2598_v3, %v1112_v63  ;;  %v1309_v51 = vld [vmem:[%s2395_s15 + $0x10] sm:$0xff] }
 0x149   : > { %v1687_v6 = vsel %vm3175_vm11, %v1685_v27, %v1686_v53  ;;  %v2908_v11 = vadd.s32 %v2598_v3, %v1114_v56  ;;  %v1997_v12 = vpop.eup %1996  ;;  %v1358_v14 = vrot.slane %v1202_v48, 5  ;;  %vm1173_vm12 = vcmp.lt.s32.totalorder %v2895_v62, 4000  ;;  %v1002_v48 = vpop.f32.mrf.mxu2 }
 0x14a   : > { %vm1172_vm4 = vcmp.lt.s32.totalorder %v2898_v58, 4000  ;;  %v1113_v16 = vadd.s32 3072, %v2594_v1  ;;  %v1204_v17 = vsel %vm1173_vm12, %v902_v7, 0.0  ;;  %vm1174_vm0 = vcmp.lt.s32.totalorder %v2902_v8, 4000  ;;  %v962_v61 = vpop.f32.mrf.mxu0 }
 0x14b   : > { %v1203_v18 = vsel %vm1172_vm4, %v882_v2, 0.0  ;;  %v1115_v5 = vadd.s32 3328, %v2594_v1  ;;  %v1294_v22 = vsel %vm1170_vm3, %v1997_v12, 0.0  ;;  %v1256_v23 = vmul.f32 1.442695, %v1204_v17 }
 0x14c   : > { %v1360_v15 = vrot.slane %v1204_v17, 3  ;;  %v1254_v29 = vmul.f32 1.442695, %v1203_v18  ;;  %v1359_v32 = vrot.slane %v1203_v18, 4  ;;  %v1205_v30 = vsel %vm1174_vm0, %v922_v4, 0.0 }
 0x14d   : > { %vm1175_vm14 = vcmp.lt.s32.totalorder %v2905_v10, 4000  ;;  %vm3146_vm15 = vcmp.lt.s32.totalorder %v2908_v11, 4000  ;;  %v1999_v9 = vpop.eup %1998  ;;  %2000 = vpow2.f32 %v1256_v23  ;;  %v1258_v40 = vmul.f32 1.442695, %v1205_v30 }
 0x14e   : > { %v1361_v57 = vrot.slane %v1205_v30, 2  ;;  %v1206_v31 = vsel %vm1175_vm14, %v942_v21, 0.0  ;;  %v1295_v19 = vsel %vm1171_vm1, %v1999_v9, 0.0  ;;  %2002 = vpow2.f32 %v1254_v29 }
 0x14f   : > { %v1260_v24 = vmul.f32 1.442695, %v1206_v31  ;;  %v2930_v33 = vadd.s32 %v2598_v3, %v1113_v16  ;;  %v1391_v25 = vsel %vm1371_vm7, %v1357_v38, %v1358_v14  ;;  %vm3176_vm10 = vcmask 1044484  }
 0x150   : > { %v1393_v34 = vsel %vm3176_vm10, %v1359_v32, %v1360_v15  ;;  %2004 = vpow2.f32 %v1258_v40  ;;  %v1362_v35 = vrot.slane %v1206_v31, 1  ;;  %v1663_v36 = vrot.slane %v1294_v22, 6 }
 0x151   : > { %v1664_v37 = vrot.slane %v1295_v19, 5  ;;  %2006 = vpow2.f32 %v1260_v24  ;;  %v2936_v27 = vsel %vm3146_vm15, %v982_v44, 0.0  ;;  %vm3177_vm13 = vcmask 1041408  }
 0x152   : > { %v1684_v45 = vsel %vm3177_vm13, %v2858_v20, %v2865_v39  ;;  %vm3178_vm8 = vcmask 1043456   ;;  %vm3179_vm9 = vcmask 1046534   ;;  %v2947_v53 = vadd.s32 %v2598_v3, %v1115_v5  ;;  %vm3181_vm10 = vmmov %vm3177_vm13 }
 0x153   : > { %v2942_v7 = vsel %vm3178_vm8, %v1579_v41, %v1582_v50  ;;  %v1394_v38 = vsel %vm3179_vm9, %v1361_v57, %v1362_v35  ;;  %vm3180_vm11 = vmmov %vm3178_vm8  ;;  %v1392_v55 = vsel %vm3181_vm10, %v2869_v43, %v1391_v25  ;;  %vm3182_vm15 = vcmask 1045508   ;;  %v2001_v20 = vpop.eup %2000 }
 0x154   : > { %v2950_v54 = vsel %vm3180_vm11, %v1684_v45, %v1687_v6  ;;  %v1395_v59 = vsel %vm3182_vm15, %v1393_v34, %v1394_v38  ;;  %vm1176_vm13 = vcmp.lt.s32.totalorder %v2930_v33, 4000  ;;  %v1689_v39 = vsel %vm1369_vm6, %v2882_v42, %v1662_v60  ;;  %v2003_v56 = vpop.eup %2002 }
 0x155   : > { %v1396_v41 = vsel %vm3178_vm8, %v1392_v55, %v1395_v59  ;;  %v1264_v63 = vmul.f32 1.442695, %v2936_v27  ;;  %vm1178_vm9 = vcmp.lt.s32.totalorder %v2947_v53, 4000  ;;  %v1690_v43 = vsel %vm1371_vm7, %v1663_v36, %v1664_v37 }
 0x156   : > { %v1297_v50 = vsel %vm1173_vm12, %v2001_v20, 0.0  ;;  %v1409_v2 = vmul.f32 %v1396_v41, %v1309_v51  ;;  %v2968_v4 = vsel %vm1178_vm9, %v1002_v48, 0.0  ;;  %v2005_v46 = vpop.eup %2004  ;;  %v1296_v42 = vsel %vm1172_vm4, %v2003_v56, 0.0  ;;  %v1509_v41 = vld [vmem:[#allocation7 + $0x8] sm:$0xff]  ;;  %v1510_v56 = vld [vmem:[#allocation7 + $0x10] sm:$0xff] }
 0x157   : > { %v1666_v6 = vrot.slane %v1297_v50, 3  ;;  %v2974_v60 = vsel %vm1176_vm13, %v962_v61, 0.0  ;;  %v1116_v12 = vadd.s32 3456, %v2594_v1  ;;  %v2007_v14 = vpop.eup %2006  ;;  %v1298_v16 = vsel %vm1174_vm0, %v2005_v46, 0.0 }
 0x158   : > { %v1431_v17 = vperm.slane %v1409_v2, 0  ;;  %v1432_v18 = vperm.slane %v1409_v2, 1  ;;  %v1266_v21 = vmul.f32 1.442695, %v2968_v4  ;;  %v1665_v5 = vrot.slane %v1296_v42, 4 }
 0x159   : > { %v1667_v22 = vrot.slane %v1298_v16, 2  ;;  %v1433_v23 = vperm.slane %v1409_v2, 2  ;;  %v1434_v15 = vperm.slane %v1409_v2, 3  ;;  %v1299_v29 = vsel %vm1175_vm14, %v2007_v14, 0.0  ;;  %v1613_v16 = vld [vmem:[#allocation8] sm:$0xff] }
 0x15a   : > { %v1435_v32 = vperm.slane %v1409_v2, 4  ;;  %v1436_v30 = vperm.slane %v1409_v2, 5  ;;  %v1437_v9 = vperm.slane %v1409_v2, 6  ;;  %v1438_v40 = vperm.slane %v1409_v2, 7  ;;  %v1022_v2 = vpop.f32.mrf.mxu3 }
 0x15b   : > { %v1493_v57 = vsel %vm1168_vm5, %v1431_v17, 0.0  ;;  %v1494_v31 = vsel %vm1169_vm2, %v1432_v18, 0.0  ;;  %v1495_v44 = vsel %vm1170_vm3, %v1433_v23, 0.0  ;;  %v1496_v19 = vsel %vm1171_vm1, %v1434_v15, 0.0  ;;  %vm3183_vm2 = vmmov %vm3181_vm10 }
 0x15c   : > { %v1497_v24 = vsel %vm1172_vm4, %v1435_v32, 0.0  ;;  %v1498_v25 = vsel %vm1173_vm12, %v1436_v30, 0.0  ;;  %v1499_v34 = vsel %vm1174_vm0, %v1437_v9, 0.0  ;;  %v1500_v52 = vsel %vm1175_vm14, %v1438_v40, 0.0  ;;  %vm3185_vm3 = vmmov %vm3183_vm2  ;;  %v1062_v30 = vpop.f32.mrf.mxu1  ;;  %v1082_v9 = vpop.f32.mrf.mxu2  ;;  %v1615_v40 = vld [vmem:[#allocation8 + $0x10] sm:$0xff] }
 0x15d   : > { %v1557_v47 = vrot.slane %v1494_v31, 7  ;;  %v1558_v35 = vrot.slane %v1495_v44, 6  ;;  %v1559_v36 = vrot.slane %v1496_v19, 5  ;;  %v1560_v13 = vrot.slane %v1497_v24, 4  ;;  %vm3188_vm4 = vmmov %vm3182_vm15 }
 0x15e   : > { %v1561_v37 = vrot.slane %v1498_v25, 3  ;;  %v1562_v45 = vrot.slane %v1499_v34, 2  ;;  %v1563_v26 = vrot.slane %v1500_v52, 1  ;;  %v1691_v51 = vsel %vm3183_vm2, %v1689_v39, %v1690_v43  ;;  %v1508_v39 = vld [vmem:[#allocation7] sm:$0xff]  ;;  %vm3190_vm14 = vmmov %vm3178_vm8 }
 0x15f   : > { %v1584_v58 = vsel %vm1369_vm6, %v1493_v57, %v1557_v47  ;;  %v1585_v62 = vsel %vm1371_vm7, %v1558_v35, %v1559_v36  ;;  %v1668_v38 = vrot.slane %v1299_v29, 1  ;;  %vm3184_vm5 = vcmask 1044484   ;;  %vm3191_vm15 = vmmov %vm3188_vm4 }
 0x160   : > { %v1692_v8 = vsel %vm3184_vm5, %v1665_v5, %v1666_v6  ;;  %v1586_v48 = vsel %vm3185_vm3, %v1584_v58, %v1585_v62  ;;  %vm3186_vm1 = vmmov %vm3184_vm5  ;;  %vm3187_vm12 = vcmask 1046534   ;;  %2008 = vpow2.f32 %v1264_v63  ;;  %v1042_v5 = vpop.f32.mrf.mxu0 }
 0x161   : > { %v1587_v10 = vsel %vm3186_vm1, %v1560_v13, %v1561_v37  ;;  %v1588_v55 = vsel %vm3187_vm12, %v1562_v45, %v1563_v26  ;;  %vm3189_vm0 = vmmov %vm3187_vm12  ;;  %v1262_v20 = vmul.f32 1.442695, %v2974_v60  ;;  %2010 = vpow2.f32 %v1266_v21  ;;  %v1614_v21 = vld [vmem:[#allocation8 + $0x8] sm:$0xff]  ;;  %v1310_v45 = vld [vmem:[%s2395_s15 + $0x18] sm:$0xff] }
 0x162   : > { %v1589_v59 = vsel %vm3188_vm4, %v1587_v10, %v1588_v55  ;;  %v1693_v61 = vsel %vm3189_vm0, %v1667_v22, %v1668_v38  ;;  %v1364_v50 = vrot.slane %v2968_v4, 6  ;;  %v3011_v46 = vadd.s32 %v2598_v3, %v1116_v12  ;;  %vm3192_vm10 = vmmov %vm3178_vm8 }
 0x163   : > { %v1590_v43 = vsel %vm3190_vm14, %v1586_v48, %v1589_v59  ;;  %v1694_v6 = vsel %vm3191_vm15, %v1692_v8, %v1693_v61  ;;  %v1117_v42 = vadd.s32 3584, %v2594_v1  ;;  %v1118_v63 = vadd.s32 3712, %v2594_v1  ;;  %vm3193_vm3 = vmmov %vm3186_vm1 }
 0x164   : > { %v1119_v14 = vadd.s32 3840, %v2594_v1  ;;  %vm1179_vm11 = vcmp.lt.s32.totalorder %v3011_v46, 4000  ;;  %v1601_v17 = vadd.f32 %v2805_v28, %v1508_v39  ;;  %v1602_v18 = vadd.f32 %v2942_v7, %v1509_v41  ;;  %vm3196_vm0 = vmmov %vm3192_vm10 }
 0x165   : > { %v1603_v4 = vadd.f32 %v1590_v43, %v1510_v56  ;;  %v1210_v12 = vsel %vm1179_vm11, %v1022_v2, 0.0  ;;  %v3023_v22 = vadd.s32 %v2598_v3, %v1117_v42  ;;  %v3026_v23 = vadd.s32 %v2598_v3, %v1118_v63  ;;  %vm3198_vm15 = vmmov %vm3193_vm3 }
 0x166   : > { %v3029_v1 = vadd.s32 %v2598_v3, %v1119_v14  ;;  %v1695_v15 = vsel %vm3192_vm10, %v1691_v51, %v1694_v6  ;;  %v1268_v28 = vmul.f32 1.442695, %v1210_v12  ;;  %v1365_v29 = vrot.slane %v1210_v12, 5  ;;  %1605 = vst [vmem:[#allocation7] sm:$0xff] %v1601_v17  ;;  %v2009_v32 = vpop.eup %2008  ;;  %vm3202_vm10 = vmmov %vm3188_vm4 }
 0x167   : > { %v1706_v7 = vadd.f32 %v2829_v49, %v1613_v16  ;;  %vm1180_vm8 = vcmp.lt.s32.totalorder %v3023_v22, 4000  ;;  %vm1181_vm2 = vcmp.lt.s32.totalorder %v3026_v23, 4000  ;;  %1606 = vst [vmem:[#allocation7 + $0x8] sm:$0xff] %v1602_v18  ;;  %v1707_v3 = vadd.f32 %v2950_v54, %v1614_v21  ;;  %v2011_v57 = vpop.eup %2010 }
 0x168   : > { %vm1182_vm5 = vcmp.lt.s32.totalorder %v3029_v1, 4000  ;;  %2012 = vpow2.f32 %v1268_v28  ;;  %v1211_v31 = vsel %vm1180_vm8, %v1042_v5, 0.0  ;;  %1607 = vst [vmem:[#allocation7 + $0x10] sm:$0xff] %v1603_v4  ;;  %v1363_v49 = vrot.slane %v2936_v27, 7 }
 0x169   : > { %2014 = vpow2.f32 %v1262_v20  ;;  %v1270_v44 = vmul.f32 1.442695, %v1211_v31  ;;  %v1366_v19 = vrot.slane %v1211_v31, 4  ;;  %1710 = vst [vmem:[#allocation8] sm:$0xff] %v1706_v7  ;;  %v1398_v24 = vsel %vm1371_vm7, %v1364_v50, %v1365_v29  ;;  %v1511_v31 = vld [vmem:[#allocation7 + $0x18] sm:$0xff] }
 0x16a   : > { %v1212_v25 = vsel %vm1181_vm2, %v1062_v30, 0.0  ;;  %v1213_v54 = vsel %vm1182_vm5, %v1082_v9, 0.0  ;;  %v1708_v34 = vadd.f32 %v1695_v15, %v1615_v40  ;;  %1711 = vst [vmem:[#allocation8 + $0x8] sm:$0xff] %v1707_v3  ;;  %v1302_v27 = vsel %vm1178_vm9, %v2011_v57, 0.0 }
 0x16b   : > { %2016 = vpow2.f32 %v1270_v44  ;;  %v1272_v52 = vmul.f32 1.442695, %v1212_v25  ;;  %v1367_v47 = vrot.slane %v1212_v25, 3  ;;  %v1274_v35 = vmul.f32 1.442695, %v1213_v54  ;;  %v1616_v44 = vld [vmem:[#allocation8 + $0x18] sm:$0xff] }
 0x16c   : > { %v1368_v36 = vrot.slane %v1213_v54, 2  ;;  %1712 = vst [vmem:[#allocation8 + $0x10] sm:$0xff] %v1708_v34  ;;  %v1397_v13 = vsel %vm1369_vm6, %v2974_v60, %v1363_v49  ;;  %vm3194_vm1 = vcmp.lt.s32.totalorder %v2908_v11, 4000  ;;  %vm3195_vm12 = vcmask 1041408  }
 0x16d   : > { %2018 = vpow2.f32 %v1272_v52  ;;  %v1400_v37 = vsel %vm3193_vm3, %v1366_v19, %v1367_v47  ;;  %v1301_v51 = vsel %vm3194_vm1, %v2009_v32, 0.0  ;;  %v1399_v58 = vsel %vm3195_vm12, %v1397_v13, %v1398_v24  ;;  %vm3197_vm14 = vmmov %vm3194_vm1 }
 0x16e   : > { %v2013_v26 = vpop.eup %2012  ;;  %2020 = vpow2.f32 %v1274_v35  ;;  %v1401_v62 = vsel %vm3188_vm4, %v1400_v37, %v1368_v36  ;;  %v1670_v8 = vrot.slane %v1302_v27, 6  ;;  %v1669_v61 = vrot.slane %v1301_v51, 7 }
 0x16f   : > { %v2015_v38 = vpop.eup %2014  ;;  %v1303_v48 = vsel %vm1179_vm11, %v2013_v26, 0.0  ;;  %v1402_v60 = vsel %vm3196_vm0, %v1399_v58, %v1401_v62 }
 0x170   : > { %v1671_v10 = vrot.slane %v1303_v48, 5  ;;  %v1410_v55 = vmul.f32 %v1402_v60, %v1310_v45  ;;  %v1300_v20 = vsel %vm1176_vm13, %v2015_v38, 0.0 }
 0x171   : > { %v2017_v59 = vpop.eup %2016  ;;  %v1696_v22 = vsel %vm1369_vm6, %v1300_v20, %v1669_v61 }
 0x172   : > { %v1304_v39 = vsel %vm1180_vm8, %v2017_v59, 0.0  ;;  %v1439_v41 = vperm.slane %v1410_v55, 0  ;;  %v1440_v56 = vperm.slane %v1410_v55, 1  ;;  %v1697_v50 = vsel %vm1371_vm7, %v1670_v8, %v1671_v10 }
 0x173   : > { %v2019_v43 = vpop.eup %2018  ;;  %v1672_v2 = vrot.slane %v1304_v39, 4  ;;  %v1441_v6 = vperm.slane %v1410_v55, 2  ;;  %v1442_v42 = vperm.slane %v1410_v55, 3  ;;  %v1443_v16 = vperm.slane %v1410_v55, 4 }
 0x174   : > { %v2021_v63 = vpop.eup %2020  ;;  %v1305_v14 = vsel %vm1181_vm2, %v2019_v43, 0.0  ;;  %v1444_v17 = vperm.slane %v1410_v55, 5  ;;  %v1445_v18 = vperm.slane %v1410_v55, 6  ;;  %v1501_v12 = vsel %vm1176_vm13, %v1439_v41, 0.0  ;;  %vm3199_vm13 = vmmov %vm3193_vm3 }
 0x175   : > { %v1673_v4 = vrot.slane %v1305_v14, 3  ;;  %v1306_v21 = vsel %vm1182_vm5, %v2021_v63, 0.0  ;;  %v1502_v5 = vsel %vm3197_vm14, %v1440_v56, 0.0  ;;  %v1503_v15 = vsel %vm1178_vm9, %v1441_v6, 0.0  ;;  %vm3200_vm9 = vmmov %vm3195_vm12 }
 0x176   : > { %v1504_v28 = vsel %vm1179_vm11, %v1442_v42, 0.0  ;;  %v1505_v29 = vsel %vm1180_vm8, %v1443_v16, 0.0  ;;  %v1506_v7 = vsel %vm1181_vm2, %v1444_v17, 0.0  ;;  %v1507_v33 = vsel %vm1182_vm5, %v1445_v18, 0.0  ;;  %vm3201_vm11 = vmmov %vm3200_vm9 }
 0x177   : > { %v1699_v32 = vsel %vm3198_vm15, %v1672_v2, %v1673_v4  ;;  %v1564_v30 = vrot.slane %v1502_v5, 7  ;;  %v1565_v11 = vrot.slane %v1503_v15, 6  ;;  %v1566_v9 = vrot.slane %v1504_v28, 5  ;;  %vm3205_vm8 = vmmov %vm3196_vm0 }
 0x178   : > { %v1567_v40 = vrot.slane %v1505_v29, 4  ;;  %v1568_v53 = vrot.slane %v1506_v7, 3  ;;  %v1569_v3 = vrot.slane %v1507_v33, 2  ;;  %v1674_v57 = vrot.slane %v1306_v21, 2 }
 0x179   : > { %v1591_v46 = vsel %vm1369_vm6, %v1501_v12, %v1564_v30  ;;  %v1592_v23 = vsel %vm1371_vm7, %v1565_v11, %v1566_v9  ;;  %v1698_v1 = vsel %vm3200_vm9, %v1696_v22, %v1697_v50  ;;  %vm3203_vm6 = vmmov %vm3188_vm4  ;;  %vm1610_vm2 = vcmp.lt.s32.totalorder %v1088_v0, 896 }
 0x17a   : > { %v1594_v49 = vsel %vm3199_vm13, %v1567_v40, %v1568_v53  ;;  %v1593_v19 = vsel %vm3201_vm11, %v1591_v46, %v1592_v23  ;;  %v1700_v25 = vsel %vm3203_vm6, %v1699_v32, %v1674_v57  ;;  %vm3204_vm7 = vmmov %vm3196_vm0 }
 0x17b   : > { %v1595_v24 = vsel %vm3202_vm10, %v1594_v49, %v1569_v3  ;;  %v1701_v34 = vsel %vm3205_vm8, %v1698_v1, %v1700_v25 }
 0x17c   : > { %v1596_v54 = vsel %vm3204_vm7, %v1593_v19, %v1595_v24  ;;  %v1709_v47 = vadd.f32 %v1701_v34, %v1616_v44 }
 0x17d   : > { %v1604_v52 = vadd.f32 %v1596_v54, %v1511_v31 }
 0x17e   : > { %1713 = vst.msk [vmem:[#allocation8 + $0x18] sm:$0x7f] %vm1610_vm2, %v1709_v47 }
 0x17f   : > { %1612 = vst.msk [vmem:[#allocation7 + $0x18] sm:$0x7f] %vm1610_vm2, %v1604_v52  ;;  %1898 = dma.vmem_to_hbm [thread:$0]  (%p3101_p8), %s1737_s12, 496, %s1739_s7, [#allocation9]  }
 0x180   : > { %1896 = dma.vmem_to_hbm [thread:$0]  (%p3101_p8), %s1723_s8, 496, %s1725_s9, [#allocation4]  }
 0x181   : > { %2189 = dma.done.wait (%p3101_p8), [#allocation4], 496  }
 0x182   : > { %2191 = vsyncadd (%p3101_p8), [#allocation4], 4294966800 }
 0x183   : > { %2193 = dma.done.wait (%p3101_p8), [#allocation9], 496  }
 0x184   : > { %2195 = vsyncadd (%p3101_p8), [#allocation9], 4294966800 }
 0x185 PF: > { %s23_s20 = sadd.s32 1, %s2218_s20   ;;  %s3208_s15 = smov %s2202_s16 }
 0x186   : > { %p20_p13 = scmp.ge.s32.totalorder %s23_s20, 4   ;;  %s3209_s16 = smov %s2206_s17 }
 0x187   : > { %s3210_s17 = smov %s2307_s29  ;;  %s3211_s18 = smov %s2214_s19 }
 0x188   : > { %s3212_s19 = smov %s3214_s21  ;;  %22 = sbr.rel (!%p20_p13) target bundleno = 8 (0x8), region = 96 }
 0x18d   :  { %1757 = vsyncpa [#allocation3], 1 }
 0x18e   :  { %1759 = vsyncpa [#allocation3 + $0x1], 1 }
 0x18f   :  { %1760 = vsyncpa [#allocation6], 1 }
 0x190   :  { %1762 = vsyncpa [#allocation6 + $0x1], 1 }
 0x191   :  { %1763 = vsyncpa [#allocation4], 1 }
 0x192   :  { %1765 = vsyncpa [#allocation4 + $0x1], 1 }
 0x193   :  { %1766 = vsyncpa [#allocation9], 1 }

</bundles_post_ra>
